<compile_context>
chip_gen: v5e
topology: v5e:2x2
jax: 0.10.0
libtpu: 0.0.40
codegen_flags: <defaults>
</compile_context>

<pallas_src>
import functools

import jax
import jax.numpy as jnp
from jax.experimental import pallas as pl
from jax.experimental.pallas import tpu as pltpu

LANE = 128
SUBLANE = 8
NEG_BIG = -1e30  # finite "minus infinity" for padded class lanes (no NaN edge cases)


def _round_up(x, m):
    return ((x + m - 1) // m) * m


def mlp_kernel(x_ref, w1_ref, b1_ref, w2_ref, b2_ref, w3_ref, b3_ref, o_ref, *, out_size):
    # x arrives as f32 straight from HBM; cast to bf16 in-register for the MXU.
    x = x_ref[...].astype(jnp.bfloat16)

    # Hidden layer 1: bf16 matmul, f32 accumulation, bias + ReLU in f32.
    h1 = jnp.dot(x, w1_ref[...], preferred_element_type=jnp.float32)
    h1 = jnp.maximum(h1 + b1_ref[...], 0.0)

    # Hidden layer 2.
    h2 = jnp.dot(h1.astype(w2_ref.dtype), w2_ref[...], preferred_element_type=jnp.float32)
    h2 = jnp.maximum(h2 + b2_ref[...], 0.0)

    # Output layer: N padded to 128 lanes; padded lanes carry -1e30 via the bias,
    # so no explicit masking is needed before the softmax reduction.
    logits = jnp.dot(h2.astype(w3_ref.dtype), w3_ref[...], preferred_element_type=jnp.float32)
    logits = logits + b3_ref[...]

    # Numerically stable log_softmax over dim=1 (padded lanes contribute exp(-huge)=0).
    m = jnp.max(logits, axis=1, keepdims=True)
    shifted = logits - m
    lse = jnp.log(jnp.sum(jnp.exp(shifted), axis=1, keepdims=True))
    logp = shifted - lse

    # Store only the real class lanes (narrow, masked store).
    o_ref[...] = logp[:, :out_size].astype(o_ref.dtype)


def prepare_params(w1, b1, w2, b2, w3, b3):
    """One-time cast/pad of the static parameters (hoisted out of the forward)."""
    in_features, h1d = w1.shape
    h2d = w2.shape[1]
    out_size = w3.shape[1]
    out_padded = _round_up(out_size, LANE)  # 10 -> 128 for a full-lane MXU N

    w1p = w1.astype(jnp.bfloat16)
    w2p = w2.astype(jnp.bfloat16)
    w3p = jnp.pad(w3.astype(jnp.bfloat16), ((0, 0), (0, out_padded - out_size)))
    b1p = b1.reshape(1, h1d).astype(jnp.float32)
    b2p = b2.reshape(1, h2d).astype(jnp.float32)
    # Pad bias lanes with -1e30: padded logits = 0 (zero w3 pad cols) + (-1e30).
    b3p = jnp.pad(
        b3.reshape(1, out_size).astype(jnp.float32),
        ((0, 0), (0, out_padded - out_size)),
        constant_values=NEG_BIG,
    )
    return (w1p, b1p, w2p, b2p, w3p, b3p)


def _vmem_capped_rows(in_features, h1d, h2d, out_padded, out_size, budget_bytes):
    # Fixed (batch-independent) VMEM: bf16 weights + f32 biases, assume double-buffered.
    fixed = 2 * ((in_features * h1d + h1d * h2d + h2d * out_padded) * 2
                 + (h1d + h2d + out_padded) * 4)
    # Per batch-row: f32 x tile (x2 buffers) + in-kernel bf16 copy of x
    # + f32 intermediates (h1, h2, padded logits) + f32 out tile (x2 buffers).
    per_row = (2 * in_features * 4) + (in_features * 2) \
        + (h1d + h2d + out_padded) * 4 + (2 * out_size * 4)
    rows = max(SUBLANE, (budget_bytes - fixed) // per_row)
    return (rows // SUBLANE) * SUBLANE


@functools.partial(jax.jit, static_argnames=("out_size", "tile_batch"))
def mlp_forward(x, params, *, out_size=10, tile_batch=2048):
    w1p, b1p, w2p, b2p, w3p, b3p = params
    batch, in_features = x.shape
    h1d = w1p.shape[1]
    h2d = w2p.shape[1]
    out_padded = w3p.shape[1]

    # Batch tile: as large as the VMEM budget allows (amortizes ~0.35 us/step overhead),
    # multiple of 8, never larger than the (rounded-up) batch.
    vmem_budget = 20 * 1024 * 1024  # working-set target; safe on v5e/v6e/v7x
    tb = min(int(tile_batch),
             _vmem_capped_rows(in_features, h1d, h2d, out_padded, out_size, vmem_budget),
             _round_up(batch, SUBLANE))
    tb = max(SUBLANE, _round_up(tb, SUBLANE))
    batch_padded = _round_up(batch, tb)
    if batch_padded != batch:  # only pad when the tile doesn't divide the batch
        x = jnp.pad(x, ((0, batch_padded - batch), (0, 0)))
    grid = (batch_padded // tb,)

    kernel = functools.partial(mlp_kernel, out_size=out_size)

    out = pl.pallas_call(
        kernel,
        out_shape=jax.ShapeDtypeStruct((batch_padded, out_size), jnp.float32),
        grid=grid,
        in_specs=[
            # Activations: f32 straight from HBM, tiled over batch (double-buffered).
            pl.BlockSpec((tb, in_features), lambda i: (i, 0)),
            # Weights / biases: constant index maps -> fetched once, VMEM-resident.
            pl.BlockSpec((in_features, h1d), lambda i: (0, 0)),
            pl.BlockSpec((1, h1d), lambda i: (0, 0)),
            pl.BlockSpec((h1d, h2d), lambda i: (0, 0)),
            pl.BlockSpec((1, h2d), lambda i: (0, 0)),
            pl.BlockSpec((h2d, out_padded), lambda i: (0, 0)),
            pl.BlockSpec((1, out_padded), lambda i: (0, 0)),
        ],
        # Narrow output: last block dim == full array dim (out_size), no padded writeback.
        out_specs=pl.BlockSpec((tb, out_size), lambda i: (i, 0)),
        compiler_params=pltpu.CompilerParams(
            dimension_semantics=("parallel",),      # megacore on v7x; no-op on v5e/v6e
            vmem_limit_bytes=32 * 1024 * 1024,      # headroom on v5e; within v7x physical
        ),
    )(x, w1p, b1p, w2p, b2p, w3p, b3p)

    if batch_padded != batch:
        out = out[:batch]
    return out


def init_params(key, input_size=784, hidden1=64, hidden2=64, output_size=10):
    # PyTorch-style uniform(-1/sqrt(fan_in), 1/sqrt(fan_in)) init, [in, out] weight
    # layout (equivalent to PyTorch's x @ W.T with its [out, in] layout).
    ks = jax.random.split(key, 6)

    def lin(kw, kb, fan_in, fan_out):
        bound = 1.0 / jnp.sqrt(jnp.float32(fan_in))
        w = jax.random.uniform(kw, (fan_in, fan_out), jnp.float32, -bound, bound)
        b = jax.random.uniform(kb, (fan_out,), jnp.float32, -bound, bound)
        return w, b

    w1, b1 = lin(ks[0], ks[1], input_size, hidden1)
    w2, b2 = lin(ks[2], ks[3], hidden1, hidden2)
    w3, b3 = lin(ks[4], ks[5], hidden2, output_size)
    return w1, b1, w2, b2, w3, b3


def reference_forward(x, w1, b1, w2, b2, w3, b3):
    # Mirrors the kernel's bf16 cast points so the check isolates kernel correctness.
    f32 = jnp.float32
    xb = x.astype(jnp.bfloat16).astype(f32)
    w1b = w1.astype(jnp.bfloat16).astype(f32)
    w2b = w2.astype(jnp.bfloat16).astype(f32)
    w3b = w3.astype(jnp.bfloat16).astype(f32)
    h1 = jnp.maximum(xb @ w1b + b1, 0.0).astype(jnp.bfloat16).astype(f32)
    h2 = jnp.maximum(h1 @ w2b + b2, 0.0).astype(jnp.bfloat16).astype(f32)
    logits = h2 @ w3b + b3
    return jax.nn.log_softmax(logits, axis=1)


if __name__ == "__main__":
    key = jax.random.PRNGKey(0)
    k_x, k_p = jax.random.split(key)

    batch, input_size, hidden1, hidden2, output_size = 256, 784, 64, 64, 10
    x = jax.random.normal(k_x, (batch, input_size), jnp.float32)
    w1, b1, w2, b2, w3, b3 = init_params(k_p, input_size, hidden1, hidden2, output_size)
    params = prepare_params(w1, b1, w2, b2, w3, b3)

    # Small tile here only to exercise the multi-tile batch pipeline (grid=(2,));
    # production default is tile_batch=2048.
    out = mlp_forward(x, params, out_size=output_size, tile_batch=128)
    out = jax.block_until_ready(out)
    assert out.shape == (batch, output_size)

    ref = reference_forward(x, w1, b1, w2, b2, w3, b3)
    assert jnp.all(jnp.isfinite(out)), "non-finite values in kernel output"
    assert jnp.allclose(out, ref, atol=5e-3, rtol=5e-3), "mismatch vs reference"

    print("KERNEL_OK")
</pallas_src>

<mosaic_0001>
module attributes {stable_mosaic.version = 11 : i64} {
  func.func @mlp_kernel(%arg0: i32, %arg1: memref<128x784xf32, #tpu.memory_space<vmem>>, %arg2: memref<784x64xbf16, #tpu.memory_space<vmem>>, %arg3: memref<1x64xf32, #tpu.memory_space<vmem>>, %arg4: memref<64x64xbf16, #tpu.memory_space<vmem>>, %arg5: memref<1x64xf32, #tpu.memory_space<vmem>>, %arg6: memref<64x128xbf16, #tpu.memory_space<vmem>>, %arg7: memref<1x128xf32, #tpu.memory_space<vmem>>, %arg8: memref<128x10xf32, #tpu.memory_space<vmem>>) attributes {dimension_semantics = [#tpu.dimension_semantics<parallel>], iteration_bounds = array<i64: 2>, scalar_prefetch = 0 : i64, scratch_operands = 0 : i64, tpu.core_type = #tpu.core_type<tc>, window_params = [{transform_indices = @transform_0, window_bounds = array<i64: 128, 784>}, {pipeline_mode = #tpu.pipeline_mode<synchronous>, transform_indices = @transform_1, window_bounds = array<i64: 784, 64>}, {pipeline_mode = #tpu.pipeline_mode<synchronous>, transform_indices = @transform_2, window_bounds = array<i64: 1, 64>}, {pipeline_mode = #tpu.pipeline_mode<synchronous>, transform_indices = @transform_3, window_bounds = array<i64: 64, 64>}, {pipeline_mode = #tpu.pipeline_mode<synchronous>, transform_indices = @transform_4, window_bounds = array<i64: 1, 64>}, {pipeline_mode = #tpu.pipeline_mode<synchronous>, transform_indices = @transform_5, window_bounds = array<i64: 64, 128>}, {pipeline_mode = #tpu.pipeline_mode<synchronous>, transform_indices = @transform_6, window_bounds = array<i64: 1, 128>}, {transform_indices = @transform_7, window_bounds = array<i64: 128, 10>}]} {
    %c0 = arith.constant 0 : index
    %c0_0 = arith.constant 0 : index
    %0 = vector.load %arg1[%c0, %c0_0] : memref<128x784xf32, #tpu.memory_space<vmem>>, vector<128x784xf32>
    %1 = arith.truncf %0 : vector<128x784xf32> to vector<128x784xbf16>
    %c0_1 = arith.constant 0 : index
    %c0_2 = arith.constant 0 : index
    %2 = vector.load %arg2[%c0_1, %c0_2] : memref<784x64xbf16, #tpu.memory_space<vmem>>, vector<784x64xbf16>
    %cst = arith.constant dense<0.000000e+00> : vector<128x64xf32>
    %3 = tpu.matmul %1, %2, %cst {dimension_numbers = #tpu.dot_dimension_numbers<[1], [0], [0], [1], [0, 0, 1, 1], [], []>} : vector<128x784xbf16>, vector<784x64xbf16>, vector<128x64xf32> -> vector<128x64xf32>
    %c0_3 = arith.constant 0 : index
    %c0_4 = arith.constant 0 : index
    %4 = vector.load %arg3[%c0_3, %c0_4] : memref<1x64xf32, #tpu.memory_space<vmem>>, vector<1x64xf32>
    %5 = vector.broadcast %4 : vector<1x64xf32> to vector<128x64xf32>
    %6 = arith.addf %3, %5 : vector<128x64xf32>
    %cst_5 = arith.constant 0.000000e+00 : f32
    %7 = vector.broadcast %cst_5 : f32 to vector<128x64xf32>
    %8 = arith.maximumf %6, %7 : vector<128x64xf32>
    %9 = arith.truncf %8 : vector<128x64xf32> to vector<128x64xbf16>
    %c0_6 = arith.constant 0 : index
    %c0_7 = arith.constant 0 : index
    %10 = vector.load %arg4[%c0_6, %c0_7] : memref<64x64xbf16, #tpu.memory_space<vmem>>, vector<64x64xbf16>
    %cst_8 = arith.constant dense<0.000000e+00> : vector<128x64xf32>
    %11 = tpu.matmul %9, %10, %cst_8 {dimension_numbers = #tpu.dot_dimension_numbers<[1], [0], [0], [1], [0, 0, 1, 1], [], []>} : vector<128x64xbf16>, vector<64x64xbf16>, vector<128x64xf32> -> vector<128x64xf32>
    %c0_9 = arith.constant 0 : index
    %c0_10 = arith.constant 0 : index
    %12 = vector.load %arg5[%c0_9, %c0_10] : memref<1x64xf32, #tpu.memory_space<vmem>>, vector<1x64xf32>
    %13 = vector.broadcast %12 : vector<1x64xf32> to vector<128x64xf32>
    %14 = arith.addf %11, %13 : vector<128x64xf32>
    %cst_11 = arith.constant 0.000000e+00 : f32
    %15 = vector.broadcast %cst_11 : f32 to vector<128x64xf32>
    %16 = arith.maximumf %14, %15 : vector<128x64xf32>
    %17 = arith.truncf %16 : vector<128x64xf32> to vector<128x64xbf16>
    %c0_12 = arith.constant 0 : index
    %c0_13 = arith.constant 0 : index
    %18 = vector.load %arg6[%c0_12, %c0_13] : memref<64x128xbf16, #tpu.memory_space<vmem>>, vector<64x128xbf16>
    %cst_14 = arith.constant dense<0.000000e+00> : vector<128x128xf32>
    %19 = tpu.matmul %17, %18, %cst_14 {dimension_numbers = #tpu.dot_dimension_numbers<[1], [0], [0], [1], [0, 0, 1, 1], [], []>} : vector<128x64xbf16>, vector<64x128xbf16>, vector<128x128xf32> -> vector<128x128xf32>
    %c0_15 = arith.constant 0 : index
    %c0_16 = arith.constant 0 : index
    %20 = vector.load %arg7[%c0_15, %c0_16] : memref<1x128xf32, #tpu.memory_space<vmem>>, vector<1x128xf32>
    %21 = vector.broadcast %20 : vector<1x128xf32> to vector<128x128xf32>
    %22 = arith.addf %19, %21 : vector<128x128xf32>
    %cst_17 = arith.constant dense<0xFF800000> : vector<128xf32>
    %23 = vector.multi_reduction <maximumf>, %22, %cst_17 [1] : vector<128x128xf32> to vector<128xf32>
    %24 = vector.shape_cast %23 : vector<128xf32> to vector<128x1xf32>
    %25 = vector.broadcast %24 : vector<128x1xf32> to vector<128x128xf32>
    %26 = arith.subf %22, %25 : vector<128x128xf32>
    %27 = math.exp %26 : vector<128x128xf32>
    %cst_18 = arith.constant dense<0.000000e+00> : vector<128xf32>
    %28 = vector.multi_reduction <add>, %27, %cst_18 [1] : vector<128x128xf32> to vector<128xf32>
    %29 = vector.shape_cast %28 : vector<128xf32> to vector<128x1xf32>
    %30 = math.log %29 : vector<128x1xf32>
    %31 = vector.broadcast %30 : vector<128x1xf32> to vector<128x128xf32>
    %32 = arith.subf %26, %31 : vector<128x128xf32>
    %33 = vector.extract_strided_slice %32 {offsets = [0, 0], sizes = [128, 10], strides = [1, 1]} : vector<128x128xf32> to vector<128x10xf32>
    %c0_19 = arith.constant 0 : index
    %c0_20 = arith.constant 0 : index
    %34 = vector.load %arg8[%c0_19, %c0_20] : memref<128x10xf32, #tpu.memory_space<vmem>>, vector<128x10xf32>
    tpu.vector_store %arg8[%c0_19, %c0_20], %33 {strides = array<i32>} : memref<128x10xf32, #tpu.memory_space<vmem>>, vector<128x10xf32>,
    return
  }
  func.func @transform_0(%arg0: i32) -> (i32, i32) {
    %c0_i32 = arith.constant 0 : i32
    %c0_i32_0 = arith.constant 0 : i32
    return %arg0, %c0_i32 : i32, i32
  }
  func.func @transform_1(%arg0: i32) -> (i32, i32) {
    %c0_i32 = arith.constant 0 : i32
    %c0_i32_0 = arith.constant 0 : i32
    %c0_i32_1 = arith.constant 0 : i32
    return %c0_i32, %c0_i32_0 : i32, i32
  }
  func.func @transform_2(%arg0: i32) -> (i32, i32) {
    %c0_i32 = arith.constant 0 : i32
    %c0_i32_0 = arith.constant 0 : i32
    %c0_i32_1 = arith.constant 0 : i32
    return %c0_i32, %c0_i32_0 : i32, i32
  }
  func.func @transform_3(%arg0: i32) -> (i32, i32) {
    %c0_i32 = arith.constant 0 : i32
    %c0_i32_0 = arith.constant 0 : i32
    %c0_i32_1 = arith.constant 0 : i32
    return %c0_i32, %c0_i32_0 : i32, i32
  }
  func.func @transform_4(%arg0: i32) -> (i32, i32) {
    %c0_i32 = arith.constant 0 : i32
    %c0_i32_0 = arith.constant 0 : i32
    %c0_i32_1 = arith.constant 0 : i32
    return %c0_i32, %c0_i32_0 : i32, i32
  }
  func.func @transform_5(%arg0: i32) -> (i32, i32) {
    %c0_i32 = arith.constant 0 : i32
    %c0_i32_0 = arith.constant 0 : i32
    %c0_i32_1 = arith.constant 0 : i32
    return %c0_i32, %c0_i32_0 : i32, i32
  }
  func.func @transform_6(%arg0: i32) -> (i32, i32) {
    %c0_i32 = arith.constant 0 : i32
    %c0_i32_0 = arith.constant 0 : i32
    %c0_i32_1 = arith.constant 0 : i32
    return %c0_i32, %c0_i32_0 : i32, i32
  }
  func.func @transform_7(%arg0: i32) -> (i32, i32) {
    %c0_i32 = arith.constant 0 : i32
    %c0_i32_0 = arith.constant 0 : i32
    return %arg0, %c0_i32 : i32, i32
  }
}

</mosaic_0001>

<bundles_post_ra>
// kernel: mlp_forward.1
= control target key start
LH: loop header
LB: loop body
LE: loop exit
PB: predicated region body
PF: predicated region fallthrough
CT: control target
= control target key end

     0   :  { %s2186_s24 = smov 0   ;;  %s2762_s0 = inlined_call_operand.vmem [shape: f32[256,784], index: 0, kind: input, shape index: {}]   ;;  %s2763_s1 = inlined_call_operand.vmem [shape: bf16[784,64], index: 1, kind: input, shape index: {}]   ;;  %s2764_s2 = inlined_call_operand.vmem [shape: f32[1,64], index: 2, kind: input, shape index: {}]   ;;  %s2765_s3 = inlined_call_operand.vmem [shape: bf16[64,64], index: 3, kind: input, shape index: {}]   ;;  %s2766_s4 = inlined_call_operand.vmem [shape: f32[1,64], index: 4, kind: input, shape index: {}]   ;;  %s2767_s5 = inlined_call_operand.vmem [shape: bf16[64,128], index: 5, kind: input, shape index: {}]   ;;  %s2768_s6 = inlined_call_operand.vmem [shape: f32[1,128], index: 6, kind: input, shape index: {}]   ;;  %s2769_s7 = inlined_call_operand.vmem [shape: f32[256,10], index: 7, kind: output, shape index: {}]  }
   0x1 LB: > { %s1718_s25 = sadd.s32 4294967295, %s2144_s24   ;;  %p1722_p0 = scmp.ge.s32.totalorder %s2144_s24, 1  ;;  %s2144_s24 = sphi %s2186_s24, %s17_s24  }
   0x2   : > { %p239_p1 = scmp.lt.s32.totalorder %s2144_s24, 3 }
   0x4   : > { %p240_p2 = pnand %p1722_p0, %p239_p1 }
   0x5   : > { %s1723_s9 = sshll.u32 (!%p240_p2), %s1718_s25, 4 }
   0x6   : > { %243 = sbr.rel (%p240_p2) target bundleno = 998 (0x3e6), region = 48  ;;  %p273_p3 = scmp.lt.s32.totalorder (!%p240_p2), %s1723_s9, 31 }
   0xb   : > { %v1988_v0 = vld [vmem:[%s2763_s1 + $0x38] sm:$0xff]  ;;  %v1987_v1 = vld [vmem:[%s2763_s1 + $0x30] sm:$0xff]  ;;  %v1986_v2 = vld [vmem:[%s2763_s1 + $0x28] sm:$0xff]  ;;  %s2771_s9 = smov (!%p273_p3, %s1723_s9), 31  ;;  %vm850_vm0 = vcmask 130048   ;;  %vm1278_vm1 = vcmask 523264  }
   0xc   : > { %2038 = vmatpush.bf16.msra.mxu1 %v1988_v0  ;;  %2039 = vmatpush.bf16.msra.mxu2 %v1988_v0  ;;  %v1985_v3 = vld [vmem:[%s2763_s1 + $0x20] sm:$0xff]  ;;  %v1984_v4 = vld [vmem:[%s2763_s1 + $0x18] sm:$0xff]  ;;  %v1983_v5 = vld [vmem:[%s2763_s1 + $0x10] sm:$0xff]  ;;  %s2062_s16 = smul.u32 56, %s2771_s9  ;;  %s1726_s28 = sshll.u32 %s2771_s9, 3  ;;  %vm1645_vm2 = vcmask 80896  }
   0xd   : > { %2040 = vmatpush.bf16.msra.mxu3 %v1988_v0  ;;  %875 = vmatpush.bf16.msra.mxu0 %v1988_v0  ;;  %v1982_v6 = vld [vmem:[%s2763_s1 + $0x8] sm:$0xff]  ;;  %v1981_v7 = vld [vmem:[%s2763_s1] sm:$0xff]  ;;  %v2004_v12 = vld [vmem:[%s2763_s1 + $0xb8] sm:$0xff]  ;;  %s2709_s8 = scalar_lea.vmem %s2769_s7, %s1726_s28 }
   0xe   : > { %s2221_s21 = scalar_lea.vmem %s2762_s0, %s2062_s16  ;;  %v1996_v15 = vld [vmem:[%s2763_s1 + $0x78] sm:$0xff]  ;;  %v2003_v22 = vld [vmem:[%s2763_s1 + $0xb0] sm:$0xff]  ;;  %v2002_v27 = vld [vmem:[%s2763_s1 + $0xa8] sm:$0xff] }
   0xf   : > { %v314_v8 = vld [vmem:[%s2221_s21 + $0xe0] sm:$0xff]  ;;  %v321_v9 = vld [vmem:[%s2221_s21 + $0x118] sm:$0xff]  ;;  %v1995_v24 = vld [vmem:[%s2763_s1 + $0x70] sm:$0xff] }
  0x10   : > { %2041 = vmatpush.bf16.msra.mxu1 %v1987_v1  ;;  %2042 = vmatpush.bf16.msra.mxu2 %v1987_v1  ;;  %v342_v10 = vld [vmem:[%s2221_s21 + $0x1c0] sm:$0xff]  ;;  %v349_v11 = vld [vmem:[%s2221_s21 + $0x1f8] sm:$0xff]  ;;  %v412_v17 = vpack.c.bf16 %v321_v9, %v314_v8  ;;  %v2011_v25 = vld [vmem:[%s2763_s1 + $0xf0] sm:$0xff] }
  0x11   : > { %2043 = vmatpush.bf16.msra.mxu3 %v1987_v1  ;;  %876 = vmatpush.bf16.msra.mxu0 %v1987_v1  ;;  %v370_v13 = vld [vmem:[%s2221_s21 + $0x2a0] sm:$0xff]  ;;  %v377_v14 = vld [vmem:[%s2221_s21 + $0x2d8] sm:$0xff]  ;;  %v426_v18 = vpack.c.bf16 %v349_v11, %v342_v10  ;;  %v2019_v28 = vld [vmem:[%s2763_s1 + $0x130] sm:$0xff] }
  0x12   : > { %v2012_v16 = vld [vmem:[%s2763_s1 + $0xf8] sm:$0xff]  ;;  %v440_v19 = vpack.c.bf16 %v377_v14, %v370_v13  ;;  %v286_v20 = vld [vmem:[%s2221_s21] sm:$0xff]  ;;  %v1994_v29 = vld [vmem:[%s2763_s1 + $0x68] sm:$0xff] }
  0x13   : > { %v293_v21 = vld [vmem:[%s2221_s21 + $0x38] sm:$0xff]  ;;  %v2010_v30 = vld [vmem:[%s2763_s1 + $0xe8] sm:$0xff]  ;;  %v2001_v31 = vld [vmem:[%s2763_s1 + $0xa0] sm:$0xff] }
  0x14   : > { %2044 = vmatpush.bf16.msra.mxu1 %v1986_v2  ;;  %2045 = vmatpush.bf16.msra.mxu2 %v1986_v2  ;;  %v2020_v23 = vld [vmem:[%s2763_s1 + $0x138] sm:$0xff]  ;;  %v398_v26 = vpack.c.bf16 %v293_v21, %v286_v20  ;;  %v2018_v32 = vld [vmem:[%s2763_s1 + $0x128] sm:$0xff]  ;;  %v1993_v33 = vld [vmem:[%s2763_s1 + $0x60] sm:$0xff] }
  0x15   : > { %2046 = vmatpush.bf16.msra.mxu3 %v1986_v2  ;;  %877 = vmatpush.bf16.msra.mxu0 %v1986_v2  ;;  %v2009_v34 = vld [vmem:[%s2763_s1 + $0xe0] sm:$0xff]  ;;  %v328_v35 = vld [vmem:[%s2221_s21 + $0x150] sm:$0xff]  ;;  %v335_v36 = vld [vmem:[%s2221_s21 + $0x188] sm:$0xff] }
  0x16   : > { %v356_v37 = vld [vmem:[%s2221_s21 + $0x230] sm:$0xff]  ;;  %v363_v38 = vld [vmem:[%s2221_s21 + $0x268] sm:$0xff]  ;;  %v2000_v39 = vld [vmem:[%s2763_s1 + $0x98] sm:$0xff]  ;;  %v419_v45 = vpack.c.bf16 %v335_v36, %v328_v35 }
  0x17   : > { %v384_v40 = vld [vmem:[%s2221_s21 + $0x310] sm:$0xff]  ;;  %v391_v41 = vld [vmem:[%s2221_s21 + $0x348] sm:$0xff]  ;;  %v2017_v42 = vld [vmem:[%s2763_s1 + $0x120] sm:$0xff]  ;;  %v433_v46 = vpack.c.bf16 %v363_v38, %v356_v37 }
  0x18   : > { %2047 = vmatpush.bf16.msra.mxu1 %v1985_v3  ;;  %2048 = vmatpush.bf16.msra.mxu2 %v1985_v3  ;;  %v1992_v43 = vld [vmem:[%s2763_s1 + $0x58] sm:$0xff]  ;;  %v447_v47 = vpack.c.bf16 %v391_v41, %v384_v40  ;;  %v300_v48 = vld [vmem:[%s2221_s21 + $0x70] sm:$0xff]  ;;  %v307_v49 = vld [vmem:[%s2221_s21 + $0xa8] sm:$0xff] }
  0x19   : > { %2049 = vmatpush.bf16.msra.mxu3 %v1985_v3  ;;  %878 = vmatpush.bf16.msra.mxu0 %v1985_v3  ;;  %v2008_v44 = vld [vmem:[%s2763_s1 + $0xd8] sm:$0xff]  ;;  %v1999_v50 = vld [vmem:[%s2763_s1 + $0x90] sm:$0xff]  ;;  %v405_v54 = vpack.c.bf16 %v307_v49, %v300_v48  ;;  %v1998_v55 = vld [vmem:[%s2763_s1 + $0x88] sm:$0xff] }
  0x1a   : > { %v2016_v51 = vld [vmem:[%s2763_s1 + $0x118] sm:$0xff]  ;;  %v1991_v52 = vld [vmem:[%s2763_s1 + $0x50] sm:$0xff]  ;;  %v1990_v57 = vld [vmem:[%s2763_s1 + $0x48] sm:$0xff] }
  0x1b   : > { %v2007_v53 = vld [vmem:[%s2763_s1 + $0xd0] sm:$0xff]  ;;  %v2006_v58 = vld [vmem:[%s2763_s1 + $0xc8] sm:$0xff]  ;;  %v1997_v59 = vld [vmem:[%s2763_s1 + $0x80] sm:$0xff] }
  0x1c   : > { %2050 = vmatpush.bf16.msra.mxu1 %v1984_v4  ;;  %2051 = vmatpush.bf16.msra.mxu2 %v1984_v4  ;;  %v2015_v56 = vld [vmem:[%s2763_s1 + $0x110] sm:$0xff]  ;;  %v2014_v60 = vld [vmem:[%s2763_s1 + $0x108] sm:$0xff]  ;;  %v1989_v61 = vld [vmem:[%s2763_s1 + $0x40] sm:$0xff] }
  0x1d   : > { %2052 = vmatpush.bf16.msra.mxu3 %v1984_v4  ;;  %879 = vmatpush.bf16.msra.mxu0 %v1984_v4  ;;  %v2005_v62 = vld [vmem:[%s2763_s1 + $0xc0] sm:$0xff]  ;;  %v287_v63 = vld [vmem:[%s2221_s21 + $0x8] sm:$0xff]  ;;  %v2028_v1 = vld [vmem:[%s2763_s1 + $0x178] sm:$0xff] }
  0x1e   : > { %v2029_v0 = vld [vmem:[%s2763_s1 + $0x180] sm:$0xff]  ;;  %v288_v3 = vld [vmem:[%s2221_s21 + $0x10] sm:$0xff]  ;;  %v295_v4 = vld [vmem:[%s2221_s21 + $0x48] sm:$0xff] }
  0x1f   : > { %v294_v2 = vld [vmem:[%s2221_s21 + $0x40] sm:$0xff]  ;;  %v400_v9 = vpack.c.bf16 %v295_v4, %v288_v3  ;;  %v2027_v13 = vld [vmem:[%s2763_s1 + $0x170] sm:$0xff]  ;;  %v303_v20 = vld [vmem:[%s2221_s21 + $0x88] sm:$0xff] }
  0x20   : > { %2053 = vmatpush.bf16.msra.mxu1 %v1983_v5  ;;  %2054 = vmatpush.bf16.msra.mxu2 %v1983_v5  ;;  %v399_v8 = vpack.c.bf16 %v294_v2, %v287_v63  ;;  %v290_v11 = vld [vmem:[%s2221_s21 + $0x20] sm:$0xff]  ;;  %v2024_v41 = vld [vmem:[%s2763_s1 + $0x158] sm:$0xff]  ;;  %v2022_v3 = vld [vmem:[%s2763_s1 + $0x148] sm:$0xff] }
  0x21   : > { %2055 = vmatpush.bf16.msra.mxu3 %v1983_v5  ;;  %880 = vmatpush.bf16.msra.mxu0 %v1983_v5  ;;  %v289_v5 = vld [vmem:[%s2221_s21 + $0x18] sm:$0xff]  ;;  %v310_v21 = vld [vmem:[%s2221_s21 + $0xc0] sm:$0xff] }
  0x22   : > { %v318_v38 = vld [vmem:[%s2221_s21 + $0x100] sm:$0xff]  ;;  %v357_v4 = vld [vmem:[%s2221_s21 + $0x238] sm:$0xff] }
  0x24   : > { %2056 = vmatpush.bf16.msra.mxu1 %v1982_v6  ;;  %2057 = vmatpush.bf16.msra.mxu2 %v1982_v6 }
  0x25   : > { %2058 = vmatpush.bf16.msra.mxu3 %v1982_v6  ;;  %881 = vmatpush.bf16.msra.mxu0 %v1982_v6  ;;  %v296_v6 = vld [vmem:[%s2221_s21 + $0x50] sm:$0xff] }
  0x26   : > { %v401_v10 = vpack.c.bf16 %v296_v6, %v289_v5  ;;  %v364_v5 = vld [vmem:[%s2221_s21 + $0x270] sm:$0xff]  ;;  %v358_v6 = vld [vmem:[%s2221_s21 + $0x240] sm:$0xff] }
  0x28   : > { %2059 = vmatpush.bf16.msra.mxu1 %v1981_v7  ;;  %2060 = vmatpush.bf16.msra.mxu2 %v1981_v7 }
  0x29   : > { %2061 = vmatpush.bf16.msra.mxu3 %v1981_v7  ;;  %882 = vmatpush.bf16.msra.mxu0 %v1981_v7  ;;  %v2013_v7 = vld [vmem:[%s2763_s1 + $0x100] sm:$0xff] }
  0x2b   : > { %893 = vmatmul.bf16.vlgmr.msra.gmra.mxu1 %v412_v17  ;;  %903 = vmatmul.bf16.vlgmr.msra.gmra.mxu2 %v426_v18  ;;  %v308_v17 = vld [vmem:[%s2221_s21 + $0xb0] sm:$0xff]  ;;  %v302_v18 = vld [vmem:[%s2221_s21 + $0x80] sm:$0xff] }
  0x2c   : > { %973 = vmatpush.bf16.msrb.mxu2 %v2004_v12  ;;  %924 = vmatpush.bf16.msrb.mxu1 %v1996_v15  ;;  %v297_v12 = vld [vmem:[%s2221_s21 + $0x58] sm:$0xff]  ;;  %v2026_v15 = vld [vmem:[%s2763_s1 + $0x168] sm:$0xff] }
  0x2d   : > { %1022 = vmatpush.bf16.msrb.mxu3 %v2012_v16  ;;  %1071 = vmatpush.bf16.msrb.mxu0 %v2020_v23  ;;  %v402_v14 = vpack.c.bf16 %v297_v12, %v290_v11  ;;  %v301_v16 = vld [vmem:[%s2221_s21 + $0x78] sm:$0xff] }
  0x2e   : > { %913 = vmatmul.bf16.vlgmr.msra.gmra.mxu3 %v440_v19  ;;  %883 = vmatmul.bf16.vlgmr.msra.gmra.mxu0 %v398_v26  ;;  %v309_v19 = vld [vmem:[%s2221_s21 + $0xb8] sm:$0xff]  ;;  %v311_v26 = vld [vmem:[%s2221_s21 + $0xc8] sm:$0xff] }
  0x2f   : > { %v407_v23 = vpack.c.bf16 %v309_v19, %v302_v18  ;;  %v378_v18 = vld [vmem:[%s2221_s21 + $0x2e0] sm:$0xff]  ;;  %v372_v19 = vld [vmem:[%s2221_s21 + $0x2b0] sm:$0xff] }
  0x30   : > { %974 = vmatpush.bf16.msrb.mxu2 %v2003_v22  ;;  %925 = vmatpush.bf16.msrb.mxu1 %v1995_v24  ;;  %v406_v22 = vpack.c.bf16 %v308_v17, %v301_v16  ;;  %v408_v24 = vpack.c.bf16 %v310_v21, %v303_v20  ;;  %v2021_v16 = vld [vmem:[%s2763_s1 + $0x140] sm:$0xff]  ;;  %v371_v17 = vld [vmem:[%s2221_s21 + $0x2a8] sm:$0xff]  ;;  %v373_v21 = vld [vmem:[%s2221_s21 + $0x2b8] sm:$0xff] }
  0x31   : > { %1023 = vmatpush.bf16.msrb.mxu3 %v2011_v25  ;;  %1072 = vmatpush.bf16.msrb.mxu0 %v2019_v28  ;;  %v304_v25 = vld [vmem:[%s2221_s21 + $0x90] sm:$0xff]  ;;  %v2025_v28 = vld [vmem:[%s2763_s1 + $0x160] sm:$0xff]  ;;  %v379_v20 = vld [vmem:[%s2221_s21 + $0x2e8] sm:$0xff] }
  0x34   : > { %975 = vmatpush.bf16.msrb.mxu2 %v2002_v27  ;;  %926 = vmatpush.bf16.msrb.mxu1 %v1994_v29  ;;  %v409_v27 = vpack.c.bf16 %v311_v26, %v304_v25  ;;  %v315_v29 = vld [vmem:[%s2221_s21 + $0xe8] sm:$0xff] }
  0x35   : > { %1024 = vmatpush.bf16.msrb.mxu3 %v2010_v30  ;;  %1073 = vmatpush.bf16.msrb.mxu0 %v2018_v32  ;;  %v322_v30 = vld [vmem:[%s2221_s21 + $0x120] sm:$0xff]  ;;  %v323_v32 = vld [vmem:[%s2221_s21 + $0x128] sm:$0xff] }
  0x36   : > { %v413_v35 = vpack.c.bf16 %v322_v30, %v315_v29  ;;  %v2426_v30 = vld [vmem:[%s2764_s2] ss:$0 sm:$0xff] }
  0x38   : > { %976 = vmatpush.bf16.msrb.mxu2 %v2001_v31  ;;  %927 = vmatpush.bf16.msrb.mxu1 %v1993_v33  ;;  %v316_v31 = vld [vmem:[%s2221_s21 + $0xf0] sm:$0xff]  ;;  %v317_v33 = vld [vmem:[%s2221_s21 + $0xf8] sm:$0xff] }
  0x39   : > { %1025 = vmatpush.bf16.msrb.mxu3 %v2009_v34  ;;  %1074 = vmatpush.bf16.msrb.mxu0 %v2017_v42  ;;  %v324_v34 = vld [vmem:[%s2221_s21 + $0x130] sm:$0xff]  ;;  %v414_v36 = vpack.c.bf16 %v323_v32, %v316_v31  ;;  %v329_v42 = vld [vmem:[%s2221_s21 + $0x158] sm:$0xff] }
  0x3a   : > { %v415_v37 = vpack.c.bf16 %v324_v34, %v317_v33 }
  0x3b   : > { %898 = vmatmul.bf16.gmra.mxu1 %v419_v45  ;;  %908 = vmatmul.bf16.gmra.mxu2 %v433_v46  ;;  %v337_v45 = vld [vmem:[%s2221_s21 + $0x198] sm:$0xff]  ;;  %v331_v46 = vld [vmem:[%s2221_s21 + $0x168] sm:$0xff] }
  0x3c   : > { %977 = vmatpush.bf16.msrb.mxu2 %v2000_v39  ;;  %928 = vmatpush.bf16.msrb.mxu1 %v1992_v43  ;;  %v325_v39 = vld [vmem:[%s2221_s21 + $0x138] sm:$0xff]  ;;  %v336_v43 = vld [vmem:[%s2221_s21 + $0x190] sm:$0xff] }
  0x3d   : > { %1026 = vmatpush.bf16.msrb.mxu3 %v2008_v44  ;;  %1075 = vmatpush.bf16.msrb.mxu0 %v2016_v51  ;;  %v416_v40 = vpack.c.bf16 %v325_v39, %v318_v38  ;;  %v330_v44 = vld [vmem:[%s2221_s21 + $0x160] sm:$0xff]  ;;  %v420_v48 = vpack.c.bf16 %v336_v43, %v329_v42  ;;  %v332_v51 = vld [vmem:[%s2221_s21 + $0x170] sm:$0xff]  ;;  %v393_v39 = vld [vmem:[%s2221_s21 + $0x358] sm:$0xff] }
  0x3e   : > { %918 = vmatmul.bf16.gmra.mxu3 %v447_v47  ;;  %888 = vmatmul.bf16.gmra.mxu0 %v405_v54  ;;  %v338_v47 = vld [vmem:[%s2221_s21 + $0x1a0] sm:$0xff]  ;;  %v421_v49 = vpack.c.bf16 %v337_v45, %v330_v44  ;;  %v2023_v54 = vld [vmem:[%s2763_s1 + $0x150] sm:$0xff] }
  0x3f   : > { %v386_v38 = vld [vmem:[%s2221_s21 + $0x320] sm:$0xff] }
  0x40   : > { %978 = vmatpush.bf16.msrb.mxu2 %v1999_v50  ;;  %929 = vmatpush.bf16.msrb.mxu1 %v1991_v52  ;;  %v422_v50 = vpack.c.bf16 %v338_v47, %v331_v46  ;;  %v339_v52 = vld [vmem:[%s2221_s21 + $0x1a8] sm:$0xff]  ;;  %v449_v46 = vpack.c.bf16 %v393_v39, %v386_v38 }
  0x41   : > { %1027 = vmatpush.bf16.msrb.mxu3 %v2007_v53  ;;  %1076 = vmatpush.bf16.msrb.mxu0 %v2015_v56  ;;  %v423_v53 = vpack.c.bf16 %v339_v52, %v332_v51  ;;  %v350_v56 = vld [vmem:[%s2221_s21 + $0x200] sm:$0xff]  ;;  %v2033_v52 = vld [vmem:[%s2765_s3 + $0x18] sm:$0xff]  ;;  %v327_v38 = vld [vmem:[%s2221_s21 + $0x148] sm:$0xff] }
  0x44   : > { %979 = vmatpush.bf16.msrb.mxu2 %v1998_v55  ;;  %930 = vmatpush.bf16.msrb.mxu1 %v1990_v57  ;;  %v343_v55 = vld [vmem:[%s2221_s21 + $0x1c8] sm:$0xff]  ;;  %v344_v57 = vld [vmem:[%s2221_s21 + $0x1d0] sm:$0xff] }
  0x45   : > { %1028 = vmatpush.bf16.msrb.mxu3 %v2006_v58  ;;  %1077 = vmatpush.bf16.msrb.mxu0 %v2014_v60  ;;  %v351_v58 = vld [vmem:[%s2221_s21 + $0x208] sm:$0xff]  ;;  %v352_v60 = vld [vmem:[%s2221_s21 + $0x210] sm:$0xff] }
  0x48   : > { %980 = vmatpush.bf16.msrb.mxu2 %v1997_v59  ;;  %931 = vmatpush.bf16.msrb.mxu1 %v1989_v61  ;;  %v345_v59 = vld [vmem:[%s2221_s21 + $0x1d8] sm:$0xff]  ;;  %v427_v61 = vpack.c.bf16 %v350_v56, %v343_v55 }
  0x49   : > { %1029 = vmatpush.bf16.msrb.mxu3 %v2005_v62  ;;  %1078 = vmatpush.bf16.msrb.mxu0 %v2013_v7  ;;  %v428_v62 = vpack.c.bf16 %v351_v58, %v344_v57  ;;  %v429_v63 = vpack.c.bf16 %v352_v60, %v345_v59  ;;  %v365_v7 = vld [vmem:[%s2221_s21 + $0x278] sm:$0xff]  ;;  %v291_v59 = vld [vmem:[%s2221_s21 + $0x28] sm:$0xff]  ;;  %v298_v60 = vld [vmem:[%s2221_s21 + $0x60] sm:$0xff] }
  0x4a   : > { %v435_v11 = vpack.c.bf16 %v365_v7, %v358_v6 }
  0x4b   : > { %932 = vmatmul.bf16.vlgmr.msrb.gmra.mxu1 %v399_v8  ;;  %981 = vmatmul.bf16.vlgmr.msrb.gmra.mxu2 %v400_v9  ;;  %v359_v8 = vld [vmem:[%s2221_s21 + $0x248] sm:$0xff]  ;;  %v366_v9 = vld [vmem:[%s2221_s21 + $0x280] sm:$0xff] }
  0x4c   : > { %1176 = vmatpush.bf16.msra.mxu2 %v2029_v0  ;;  %1120 = vmatpush.bf16.msra.mxu1 %v2028_v1  ;;  %v346_v0 = vld [vmem:[%s2221_s21 + $0x1e0] sm:$0xff]  ;;  %v353_v1 = vld [vmem:[%s2221_s21 + $0x218] sm:$0xff]  ;;  %v436_v12 = vpack.c.bf16 %v366_v9, %v359_v8 }
  0x4d   : > { %v430_v2 = vpack.c.bf16 %v353_v1, %v346_v0  ;;  %1307 = vmatpush.bf16.msra.mxu3 %v2033_v52 }
  0x4e   : > { %1030 = vmatmul.bf16.vlgmr.msrb.gmra.mxu3 %v401_v10  ;;  %1079 = vmatmul.bf16.vlgmr.msrb.gmra.mxu0 %v402_v14  ;;  %v434_v10 = vpack.c.bf16 %v364_v5, %v357_v4  ;;  %v367_v14 = vld [vmem:[%s2221_s21 + $0x288] sm:$0xff] }
  0x50   : > { %1121 = vmatpush.bf16.msra.mxu1 %v2027_v13  ;;  %v360_v13 = vld [vmem:[%s2221_s21 + $0x250] sm:$0xff] }
  0x54   : > { %1122 = vmatpush.bf16.msra.mxu1 %v2026_v15  ;;  %v437_v15 = vpack.c.bf16 %v367_v14, %v360_v13  ;;  %v306_v13 = vld [vmem:[%s2221_s21 + $0xa0] sm:$0xff]  ;;  %v313_v14 = vld [vmem:[%s2221_s21 + $0xd8] sm:$0xff] }
  0x58   : > { %1123 = vmatpush.bf16.msra.mxu1 %v2025_v28  ;;  %v381_v28 = vld [vmem:[%s2221_s21 + $0x2f8] sm:$0xff] }
  0x5b   : > { %937 = vmatmul.bf16.gmra.mxu1 %v406_v22  ;;  %986 = vmatmul.bf16.gmra.mxu2 %v407_v23  ;;  %v380_v22 = vld [vmem:[%s2221_s21 + $0x2f0] sm:$0xff]  ;;  %v441_v23 = vpack.c.bf16 %v378_v18, %v371_v17 }
  0x5c   : > { %1124 = vmatpush.bf16.msra.mxu1 %v2024_v41  ;;  %v443_v26 = vpack.c.bf16 %v380_v22, %v373_v21  ;;  %v394_v41 = vld [vmem:[%s2221_s21 + $0x360] sm:$0xff]  ;;  %v411_v21 = vpack.c.bf16 %v313_v14, %v306_v13  ;;  %v355_v13 = vld [vmem:[%s2221_s21 + $0x228] sm:$0xff] }
  0x5e   : > { %1035 = vmatmul.bf16.gmra.mxu3 %v408_v24  ;;  %1084 = vmatmul.bf16.gmra.mxu0 %v409_v27  ;;  %v442_v24 = vpack.c.bf16 %v379_v20, %v372_v19  ;;  %v374_v27 = vld [vmem:[%s2221_s21 + $0x2c0] sm:$0xff] }
  0x5f   : > { %v444_v29 = vpack.c.bf16 %v381_v28, %v374_v27 }
  0x60   : > { %1125 = vmatpush.bf16.msra.mxu1 %v2023_v54 }
  0x64   : > { %1126 = vmatpush.bf16.msra.mxu1 %v2022_v3 }
  0x68   : > { %1127 = vmatpush.bf16.msra.mxu1 %v2021_v16 }
  0x6b   : > { %942 = vmatmul.bf16.gmra.mxu1 %v413_v35  ;;  %991 = vmatmul.bf16.gmra.mxu2 %v414_v36  ;;  %v385_v36 = vld [vmem:[%s2221_s21 + $0x318] sm:$0xff] }
  0x6e   : > { %1040 = vmatmul.bf16.gmra.mxu3 %v415_v37  ;;  %1089 = vmatmul.bf16.gmra.mxu0 %v416_v40  ;;  %v392_v37 = vld [vmem:[%s2221_s21 + $0x350] sm:$0xff]  ;;  %v387_v40 = vld [vmem:[%s2221_s21 + $0x328] sm:$0xff] }
  0x6f   : > { %v448_v45 = vpack.c.bf16 %v392_v37, %v385_v36  ;;  %v326_v36 = vld [vmem:[%s2221_s21 + $0x140] sm:$0xff]  ;;  %v320_v37 = vld [vmem:[%s2221_s21 + $0x110] sm:$0xff] }
  0x7b   : > { %947 = vmatmul.bf16.gmra.mxu1 %v420_v48  ;;  %996 = vmatmul.bf16.gmra.mxu2 %v421_v49  ;;  %v450_v48 = vpack.c.bf16 %v394_v41, %v387_v40  ;;  %v388_v49 = vld [vmem:[%s2221_s21 + $0x330] sm:$0xff] }
  0x7e   : > { %1045 = vmatmul.bf16.gmra.mxu3 %v422_v50  ;;  %1094 = vmatmul.bf16.gmra.mxu0 %v423_v53  ;;  %v395_v50 = vld [vmem:[%s2221_s21 + $0x368] sm:$0xff] }
  0x7f   : > { %v451_v51 = vpack.c.bf16 %v395_v50, %v388_v49 }
  0x8b   : > { %952 = vmatmul.bf16.gmra.mxu1 %v427_v61  ;;  %1001 = vmatmul.bf16.gmra.mxu2 %v428_v62  ;;  %v292_v61 = vld [vmem:[%s2221_s21 + $0x30] sm:$0xff]  ;;  %v299_v62 = vld [vmem:[%s2221_s21 + $0x68] sm:$0xff] }
  0x8c   : > { %v404_v3 = vpack.c.bf16 %v299_v62, %v292_v61 }
  0x8e   : > { %1050 = vmatmul.bf16.gmra.mxu3 %v429_v63  ;;  %1099 = vmatmul.bf16.gmra.mxu0 %v430_v2  ;;  %v403_v2 = vpack.c.bf16 %v298_v60, %v291_v59  ;;  %v334_v59 = vld [vmem:[%s2221_s21 + $0x180] sm:$0xff]  ;;  %v341_v60 = vld [vmem:[%s2221_s21 + $0x1b8] sm:$0xff] }
  0x9b   : > { %957 = vmatmul.bf16.gmra.mxu1 %v434_v10  ;;  %1006 = vmatmul.bf16.gmra.mxu2 %v435_v11  ;;  %v305_v11 = vld [vmem:[%s2221_s21 + $0x98] sm:$0xff] }
  0x9e   : > { %1055 = vmatmul.bf16.gmra.mxu3 %v436_v12  ;;  %1104 = vmatmul.bf16.gmra.mxu0 %v437_v15  ;;  %v312_v12 = vld [vmem:[%s2221_s21 + $0xd0] sm:$0xff] }
  0x9f   : > { %v410_v20 = vpack.c.bf16 %v312_v12, %v305_v11  ;;  %v354_v11 = vld [vmem:[%s2221_s21 + $0x220] sm:$0xff]  ;;  %v348_v12 = vld [vmem:[%s2221_s21 + $0x1f0] sm:$0xff] }
  0xa8   : > { %v2419_v25 = vpop.f32.mrf.mxu1 }
  0xa9   : > { %v895_v41 = vadd.f32 %v2426_v30, %v2419_v25  ;;  %v340_v25 = vld [vmem:[%s2221_s21 + $0x1b0] sm:$0xff] }
  0xab   : > { %962 = vmatmul.bf16.gmra.mxu1 %v441_v23  ;;  %1011 = vmatmul.bf16.gmra.mxu2 %v442_v24  ;;  %v884_v58 = vpop.f32.mrf.mxu0  ;;  %v2032_v24 = vld [vmem:[%s2765_s3 + $0x10] sm:$0xff] }
  0xac   : > { %v885_v0 = vadd.f32 %v2426_v30, %v884_v58  ;;  %1308 = vmatpush.bf16.msra.mxu3 %v2032_v24  ;;  %v333_v58 = vld [vmem:[%s2221_s21 + $0x178] sm:$0xff] }
  0xad   : > { %v361_v24 = vld [vmem:[%s2221_s21 + $0x258] sm:$0xff] }
  0xae   : > { %1060 = vmatmul.bf16.gmra.mxu3 %v443_v26  ;;  %v904_v31 = vpop.f32.mrf.mxu2  ;;  %1109 = vmatmul.bf16.gmra.mxu0 %v444_v29 }
  0xaf   : > { %v2429_v32 = vadd.f32 %v2426_v30, %v904_v31 }
  0xb0   : > { %v2431_v34 = vpop.f32.mrf.mxu1 }
  0xb1   : > { %v914_v33 = vpop.f32.mrf.mxu3 }
  0xb2   : > { %v2434_v35 = vadd.f32 %v2426_v30, %v914_v33  ;;  %v319_v33 = vld [vmem:[%s2221_s21 + $0x108] sm:$0xff] }
  0xb3   : > { %v886_v6 = vpop.f32.mrf.mxu0 }
  0xb4   : > { %v887_v10 = vadd.f32 %v2426_v30, %v886_v6 }
  0xb6   : > { %v906_v42 = vpop.f32.mrf.mxu2 }
  0xb7   : > { %v2443_v43 = vadd.f32 %v2426_v30, %v906_v42 }
  0xb8   : > { %v2447_v47 = vpop.f32.mrf.mxu1 }
  0xb9   : > { %v2445_v44 = vpop.f32.mrf.mxu3  ;;  %v900_v62 = vadd.f32 %v2426_v30, %v2447_v47 }
  0xbb   : > { %967 = vmatmul.bf16.gmra.mxu1 %v448_v45  ;;  %1016 = vmatmul.bf16.gmra.mxu2 %v449_v46  ;;  %v889_v16 = vpop.f32.mrf.mxu0  ;;  %v417_v45 = vpack.c.bf16 %v326_v36, %v319_v33  ;;  %v418_v46 = vpack.c.bf16 %v327_v38, %v320_v37 }
  0xbc   : > { %v890_v18 = vadd.f32 %v2426_v30, %v889_v16 }
  0xbe   : > { %1065 = vmatmul.bf16.gmra.mxu3 %v450_v48  ;;  %v909_v53 = vpop.f32.mrf.mxu2  ;;  %1114 = vmatmul.bf16.gmra.mxu0 %v451_v51  ;;  %v897_v51 = vadd.f32 %v2426_v30, %v2431_v34  ;;  %v425_v34 = vpack.c.bf16 %v341_v60, %v334_v59 }
  0xbf   : > { %v2455_v54 = vadd.f32 %v2426_v30, %v909_v53 }
  0xc0   : > { %v2457_v56 = vpop.f32.mrf.mxu1 }
  0xc1   : > { %v919_v55 = vpop.f32.mrf.mxu3  ;;  %v902_v47 = vadd.f32 %v2426_v30, %v2457_v56 }
  0xc2   : > { %v2460_v57 = vadd.f32 %v2426_v30, %v919_v55 }
  0xc3   : > { %v891_v28 = vpop.f32.mrf.mxu0 }
  0xc4   : > { %v892_v31 = vadd.f32 %v2426_v30, %v891_v28  ;;  %v362_v28 = vld [vmem:[%s2221_s21 + $0x260] sm:$0xff] }
  0xc6   : > { %v911_v63 = vpop.f32.mrf.mxu2 }
  0xc7   : > { %v2468_v1 = vadd.f32 %v2426_v30, %v911_v63 }
  0xc8   : > { %v933_v4 = vpop.f32.mrf.mxu1 }
  0xc9   : > { %v934_v5 = vadd.f32 %v933_v4, %v885_v0  ;;  %v424_v0 = vpack.c.bf16 %v340_v25, %v333_v58  ;;  %v2031_v4 = vld [vmem:[%s2765_s3 + $0x8] sm:$0xff] }
  0xca   : > { %1309 = vmatpush.bf16.msra.mxu3 %v2031_v4  ;;  %v389_v4 = vld [vmem:[%s2221_s21 + $0x338] sm:$0xff] }
  0xcb   : > { %1128 = vmatmul.bf16.vlgmr.msra.gmra.mxu1 %v403_v2  ;;  %1923 = vmatmul.msk.bf16.vlgmr.msra.gmra.mxu2 %vm850_vm0, %v404_v3 }
  0xce   : > { %v982_v7 = vpop.f32.mrf.mxu2 }
  0xcf   : > { %v2471_v8 = vadd.f32 %v982_v7, %v934_v5 }
  0xd0   : > { %v935_v9 = vpop.f32.mrf.mxu1 }
  0xd1   : > { %v936_v15 = vadd.f32 %v935_v9, %v887_v10  ;;  %v347_v10 = vld [vmem:[%s2221_s21 + $0x1e8] sm:$0xff] }
  0xd2   : > { %v431_v16 = vpack.c.bf16 %v354_v11, %v347_v10 }
  0xd6   : > { %v984_v17 = vpop.f32.mrf.mxu2 }
  0xd7   : > { %v2479_v19 = vadd.f32 %v984_v17, %v936_v15  ;;  %v432_v17 = vpack.c.bf16 %v355_v13, %v348_v12 }
  0xd8   : > { %v938_v22 = vpop.f32.mrf.mxu1 }
  0xd9   : > { %v939_v23 = vadd.f32 %v938_v22, %v890_v18 }
  0xdb   : > { %1133 = vmatmul.bf16.gmra.mxu1 %v410_v20  ;;  %1924 = vmatmul.msk.bf16.gmra.mxu2 %vm850_vm0, %v411_v21 }
  0xde   : > { %v987_v26 = vpop.f32.mrf.mxu2 }
  0xdf   : > { %v2485_v27 = vadd.f32 %v987_v26, %v939_v23  ;;  %v368_v26 = vld [vmem:[%s2221_s21 + $0x290] sm:$0xff] }
  0xe0   : > { %v940_v29 = vpop.f32.mrf.mxu1 }
  0xe1   : > { %v941_v39 = vadd.f32 %v940_v29, %v892_v31  ;;  %v369_v29 = vld [vmem:[%s2221_s21 + $0x298] sm:$0xff] }
  0xe2   : > { %v439_v36 = vpack.c.bf16 %v369_v29, %v362_v28 }
  0xe6   : > { %v989_v40 = vpop.f32.mrf.mxu2 }
  0xe7   : > { %v2494_v42 = vadd.f32 %v989_v40, %v941_v39  ;;  %v921_v39 = vpop.f32.mrf.mxu3 }
  0xe8   : > { %v943_v48 = vpop.f32.mrf.mxu1 }
  0xe9   : > { %v944_v49 = vadd.f32 %v943_v48, %v895_v41  ;;  %v375_v48 = vld [vmem:[%s2221_s21 + $0x2c8] sm:$0xff] }
  0xeb   : > { %1138 = vmatmul.bf16.gmra.mxu1 %v417_v45  ;;  %1925 = vmatmul.msk.bf16.gmra.mxu2 %vm850_vm0, %v418_v46 }
  0xee   : > { %v992_v50 = vpop.f32.mrf.mxu2 }
  0xef   : > { %v2499_v52 = vadd.f32 %v992_v50, %v944_v49  ;;  %v382_v49 = vld [vmem:[%s2221_s21 + $0x300] sm:$0xff]  ;;  %v376_v50 = vld [vmem:[%s2221_s21 + $0x2d0] sm:$0xff] }
  0xf0   : > { %v945_v53 = vpop.f32.mrf.mxu1  ;;  %v445_v58 = vpack.c.bf16 %v382_v49, %v375_v48 }
  0xf1   : > { %v946_v55 = vadd.f32 %v945_v53, %v897_v51  ;;  %v383_v51 = vld [vmem:[%s2221_s21 + $0x308] sm:$0xff] }
  0xf2   : > { %v446_v25 = vpack.c.bf16 %v383_v51, %v376_v50 }
  0xf6   : > { %v994_v61 = vpop.f32.mrf.mxu2 }
  0xf7   : > { %v2507_v63 = vadd.f32 %v994_v61, %v946_v55  ;;  %v1080_v61 = vpop.f32.mrf.mxu0 }
  0xf8   : > { %v948_v2 = vpop.f32.mrf.mxu1 }
  0xf9   : > { %v949_v3 = vadd.f32 %v948_v2, %v900_v62  ;;  %v917_v62 = vadd.f32 %v2426_v30, %v2445_v44 }
  0xfb   : > { %1143 = vmatmul.bf16.gmra.mxu1 %v424_v0  ;;  %1926 = vmatmul.msk.bf16.gmra.mxu2 %vm850_vm0, %v425_v34 }
  0xfe   : > { %v997_v5 = vpop.f32.mrf.mxu2 }
  0xff   : > { %v2515_v6 = vadd.f32 %v997_v5, %v949_v3  ;;  %v1082_v5 = vpop.f32.mrf.mxu0 }
 0x100   : > { %v950_v7 = vpop.f32.mrf.mxu1 }
 0x101   : > { %v951_v9 = vadd.f32 %v950_v7, %v902_v47  ;;  %v396_v47 = vld [vmem:[%s2221_s21 + $0x370] sm:$0xff]  ;;  %v390_v7 = vld [vmem:[%s2221_s21 + $0x340] sm:$0xff] }
 0x102   : > { %v452_v11 = vpack.c.bf16 %v396_v47, %v389_v4 }
 0x106   : > { %v999_v14 = vpop.f32.mrf.mxu2 }
 0x107   : > { %v2521_v15 = vadd.f32 %v999_v14, %v951_v9  ;;  %v397_v9 = vld [vmem:[%s2221_s21 + $0x378] sm:$0xff]  ;;  %v1085_v44 = vpop.f32.mrf.mxu0 }
 0x108   : > { %v953_v18 = vpop.f32.mrf.mxu1  ;;  %v453_v12 = vpack.c.bf16 %v397_v9, %v390_v7 }
 0x109   : > { %v954_v56 = vadd.f32 %v953_v18, %v2429_v32  ;;  %v438_v32 = vpack.c.bf16 %v368_v26, %v361_v24  ;;  %v922_v18 = vadd.f32 %v2426_v30, %v921_v39  ;;  %v2037_v30 = vld [vmem:[%s2767_s5 + $0x18] sm:$0xff] }
 0x10a   : > { %1440 = vmatpush.bf16.msra.mxu0 %v2037_v30 }
 0x10b   : > { %1148 = vmatmul.bf16.gmra.mxu1 %v431_v16  ;;  %1927 = vmatmul.msk.bf16.gmra.mxu2 %vm850_vm0, %v432_v17 }
 0x10e   : > { %v1002_v20 = vpop.f32.mrf.mxu2 }
 0x10f   : > { %v2525_v21 = vadd.f32 %v1002_v20, %v954_v56  ;;  %v1087_v28 = vpop.f32.mrf.mxu0 }
 0x110   : > { %v955_v22 = vpop.f32.mrf.mxu1 }
 0x111   : > { %v956_v23 = vadd.f32 %v955_v22, %v2443_v43  ;;  %v2030_v43 = vld [vmem:[%s2765_s3] sm:$0xff] }
 0x112   : > { %1310 = vmatpush.bf16.msra.mxu3 %v2030_v43 }
 0x116   : > { %v1004_v31 = vpop.f32.mrf.mxu2 }
 0x117   : > { %v2532_v33 = vadd.f32 %v1004_v31, %v956_v23  ;;  %v1090_v43 = vpop.f32.mrf.mxu0 }
 0x118   : > { %v958_v37 = vpop.f32.mrf.mxu1 }
 0x119   : > { %v959_v38 = vadd.f32 %v958_v37, %v2455_v54  ;;  %v1031_v54 = vpop.f32.mrf.mxu3 }
 0x11b   : > { %1153 = vmatmul.bf16.gmra.mxu1 %v438_v32  ;;  %1928 = vmatmul.msk.bf16.gmra.mxu2 %vm850_vm0, %v439_v36 }
 0x11e   : > { %v1007_v40 = vpop.f32.mrf.mxu2 }
 0x11f   : > { %v2539_v41 = vadd.f32 %v1007_v40, %v959_v38 }
 0x120   : > { %v960_v45 = vpop.f32.mrf.mxu1 }
 0x121   : > { %v961_v46 = vadd.f32 %v960_v45, %v2468_v1  ;;  %v1033_v34 = vpop.f32.mrf.mxu3 }
 0x122   : > { %v1034_v36 = vadd.f32 %v1033_v34, %v2479_v19 }
 0x124   : > { %v1083_v39 = vadd.f32 %v1082_v5, %v1034_v36 }
 0x126   : > { %v1009_v53 = vpop.f32.mrf.mxu2 }
 0x127   : > { %v2546_v55 = vadd.f32 %v1009_v53, %v961_v46  ;;  %v1092_v53 = vpop.f32.mrf.mxu0 }
 0x128   : > { %v963_v59 = vpop.f32.mrf.mxu1 }
 0x129   : > { %v964_v60 = vadd.f32 %v963_v59, %v2434_v35  ;;  %v1036_v16 = vpop.f32.mrf.mxu3 }
 0x12b   : > { %1158 = vmatmul.bf16.gmra.mxu1 %v445_v58  ;;  %1929 = vmatmul.msk.bf16.gmra.mxu2 %vm850_vm0, %v446_v25  ;;  %v1037_v58 = vadd.f32 %v1036_v16, %v2485_v27 }
 0x12e   : > { %v1012_v1 = vpop.f32.mrf.mxu2 }
 0x12f   : > { %v2552_v0 = vadd.f32 %v1012_v1, %v964_v60  ;;  %v1095_v4 = vpop.f32.mrf.mxu0 }
 0x130   : > { %v965_v2 = vpop.f32.mrf.mxu1 }
 0x131   : > { %v966_v3 = vadd.f32 %v965_v2, %v917_v62  ;;  %v1038_v23 = vpop.f32.mrf.mxu3 }
 0x132   : > { %v1039_v59 = vadd.f32 %v1038_v23, %v2494_v42 }
 0x134   : > { %v1088_v62 = vadd.f32 %v1087_v28, %v1039_v59 }
 0x136   : > { %v1014_v10 = vpop.f32.mrf.mxu2 }
 0x137   : > { %v2558_v35 = vadd.f32 %v1014_v10, %v966_v3 }
 0x138   : > { %v968_v13 = vpop.f32.mrf.mxu1 }
 0x139   : > { %v969_v14 = vadd.f32 %v968_v13, %v2460_v57  ;;  %v1032_v57 = vadd.f32 %v1031_v54, %v2471_v8  ;;  %v1041_v31 = vpop.f32.mrf.mxu3 }
 0x13b   : > { %1163 = vmatmul.bf16.gmra.mxu1 %v452_v11  ;;  %1930 = vmatmul.msk.bf16.gmra.mxu2 %vm850_vm0, %v453_v12  ;;  %v1081_v38 = vadd.f32 %v1080_v61, %v1032_v57  ;;  %v1086_v61 = vadd.f32 %v1085_v44, %v1037_v58  ;;  %v1042_v12 = vadd.f32 %v1041_v31, %v2499_v52 }
 0x13d   : > { %v1091_v44 = vadd.f32 %v1090_v43, %v1042_v12 }
 0x13e   : > { %v1017_v17 = vpop.f32.mrf.mxu2 }
 0x13f   : > { %v2563_v56 = vadd.f32 %v1017_v17, %v969_v14  ;;  %v1097_v14 = vpop.f32.mrf.mxu0  ;;  %v2036_v17 = vld [vmem:[%s2767_s5 + $0x10] sm:$0xff] }
 0x140   : > { %v970_v20 = vpop.f32.mrf.mxu1  ;;  %1441 = vmatpush.bf16.msra.mxu0 %v2036_v17 }
 0x141   : > { %v971_v22 = vadd.f32 %v970_v20, %v922_v18  ;;  %v1043_v50 = vpop.f32.mrf.mxu3 }
 0x142   : > { %v1044_v13 = vadd.f32 %v1043_v50, %v2507_v63 }
 0x144   : > { %v1093_v18 = vadd.f32 %v1092_v53, %v1044_v13 }
 0x146   : > { %v1019_v24 = vpop.f32.mrf.mxu2 }
 0x147   : > { %v2565_v26 = vadd.f32 %v1019_v24, %v971_v22 }
 0x148   : > { %v1129_v29 = vpop.f32.mrf.mxu1 }
 0x149   : > { %v1130_v40 = vadd.f32 %v1129_v29, %v1081_v38  ;;  %v1046_v1 = vpop.f32.mrf.mxu3 }
 0x14a   : > { %v1047_v36 = vadd.f32 %v1046_v1, %v2515_v6  ;;  %v2035_v1 = vld [vmem:[%s2767_s5 + $0x8] sm:$0xff] }
 0x14b   : > { %1442 = vmatpush.bf16.msra.mxu0 %v2035_v1 }
 0x14e   : > { %v1178_v32 = vpop.f32.mrf.mxu2 }
 0x14f   : > { %v1179_v45 = vadd.f32 %v1178_v32, %v1130_v40  ;;  %v1100_v32 = vpop.f32.mrf.mxu0 }
 0x150   : > { %v1131_v37 = vpop.f32.mrf.mxu1 }
 0x151   : > { %v1132_v46 = vadd.f32 %v1131_v37, %v1083_v39  ;;  %v1218_v51 = vmax.f32 %v1179_v45, 0.0  ;;  %v1048_v27 = vpop.f32.mrf.mxu3  ;;  %v1096_v39 = vadd.f32 %v1095_v4, %v1047_v36 }
 0x152   : > { %v1049_v38 = vadd.f32 %v1048_v27, %v2521_v15 }
 0x154   : > { %v1098_v40 = vadd.f32 %v1097_v14, %v1049_v38 }
 0x156   : > { %v1180_v48 = vpop.f32.mrf.mxu2 }
 0x157   : > { %v1181_v49 = vadd.f32 %v1180_v48, %v1132_v46  ;;  %v1102_v46 = vpop.f32.mrf.mxu0 }
 0x158   : > { %v1134_v8 = vpop.f32.mrf.mxu1 }
 0x159   : > { %v1219_v54 = vmax.f32 %v1181_v49, 0.0  ;;  %v1135_v34 = vadd.f32 %v1134_v8, %v1086_v61  ;;  %v1051_v24 = vpop.f32.mrf.mxu3 }
 0x15a   : > { %v1052_v58 = vadd.f32 %v1051_v24, %v2525_v21 }
 0x15b   : > { %v1234_v19 = vpack.c.bf16 %v1219_v54, %v1218_v51 }
 0x15c   : > { %v1101_v61 = vadd.f32 %v1100_v32, %v1052_v58 }
 0x15d   : > { %1947 = vmatmul.msk.bf16.vlgmr.msra.gmra.mxu3 %vm1278_vm1, %v1234_v19 }
 0x15e   : > { %v1183_v25 = vpop.f32.mrf.mxu2 }
 0x15f   : > { %v1184_v2 = vadd.f32 %v1183_v25, %v1135_v34  ;;  %v1105_v15 = vpop.f32.mrf.mxu0 }
 0x160   : > { %v1136_v60 = vpop.f32.mrf.mxu1 }
 0x161   : > { %v1137_v3 = vadd.f32 %v1136_v60, %v1088_v62  ;;  %v1220_v9 = vmax.f32 %v1184_v2, 0.0  ;;  %v1053_v30 = vpop.f32.mrf.mxu3 }
 0x162   : > { %v1054_v59 = vadd.f32 %v1053_v30, %v2532_v33 }
 0x164   : > { %v1103_v62 = vadd.f32 %v1102_v46, %v1054_v59 }
 0x166   : > { %v1185_v5 = vpop.f32.mrf.mxu2 }
 0x167   : > { %v1186_v47 = vadd.f32 %v1185_v5, %v1137_v3 }
 0x168   : > { %v1139_v7 = vpop.f32.mrf.mxu1 }
 0x169   : > { %v1221_v10 = vmax.f32 %v1186_v47, 0.0  ;;  %v1140_v20 = vadd.f32 %v1139_v7, %v1091_v44  ;;  %v1056_v53 = vpop.f32.mrf.mxu3  ;;  %v1107_v47 = vpop.f32.mrf.mxu0 }
 0x16a   : > { %v1057_v33 = vadd.f32 %v1056_v53, %v2539_v41 }
 0x16b   : > { %v1235_v11 = vpack.c.bf16 %v1221_v10, %v1220_v9 }
 0x16c   : > { %v1106_v14 = vadd.f32 %v1105_v15, %v1057_v33 }
 0x16d   : > { %1948 = vmatmul.msk.bf16.gmra.mxu3 %vm1278_vm1, %v1235_v11 }
 0x16e   : > { %v1188_v42 = vpop.f32.mrf.mxu2 }
 0x16f   : > { %v1189_v22 = vadd.f32 %v1188_v42, %v1140_v20 }
 0x170   : > { %v1141_v16 = vpop.f32.mrf.mxu1 }
 0x171   : > { %v1142_v23 = vadd.f32 %v1141_v16, %v1093_v18  ;;  %v1222_v57 = vmax.f32 %v1189_v22, 0.0  ;;  %v1058_v2 = vpop.f32.mrf.mxu3  ;;  %v1110_v16 = vpop.f32.mrf.mxu0 }
 0x172   : > { %v1059_v42 = vadd.f32 %v1058_v2, %v2546_v55  ;;  %v2034_v55 = vld [vmem:[%s2767_s5] sm:$0xff] }
 0x173   : > { %1443 = vmatpush.bf16.msra.mxu0 %v2034_v55 }
 0x174   : > { %v1108_v44 = vadd.f32 %v1107_v47, %v1059_v42 }
 0x176   : > { %v1190_v28 = vpop.f32.mrf.mxu2 }
 0x177   : > { %v1191_v52 = vadd.f32 %v1190_v28, %v1142_v23 }
 0x178   : > { %v1144_v29 = vpop.f32.mrf.mxu1 }
 0x179   : > { %v1223_v31 = vmax.f32 %v1191_v52, 0.0  ;;  %v1145_v45 = vadd.f32 %v1144_v29, %v1096_v39  ;;  %v1061_v27 = vpop.f32.mrf.mxu3 }
 0x17b   : > { %v1236_v63 = vpack.c.bf16 %v1223_v31, %v1222_v57  ;;  %v1112_v57 = vpop.f32.mrf.mxu0  ;;  %v1062_v31 = vadd.f32 %v1061_v27, %v2552_v0 }
 0x17d   : > { %1949 = vmatmul.msk.bf16.gmra.mxu3 %vm1278_vm1, %v1236_v63 }
 0x17e   : > { %v1193_v37 = vpop.f32.mrf.mxu2 }
 0x17f   : > { %v1194_v48 = vadd.f32 %v1193_v37, %v1145_v45  ;;  %v1111_v37 = vadd.f32 %v1110_v16, %v1062_v31 }
 0x180   : > { %v1146_v43 = vpop.f32.mrf.mxu1 }
 0x181   : > { %v1147_v49 = vadd.f32 %v1146_v43, %v1098_v40  ;;  %v1224_v54 = vmax.f32 %v1194_v48, 0.0  ;;  %v1063_v24 = vpop.f32.mrf.mxu3 }
 0x182   : > { %v1064_v63 = vadd.f32 %v1063_v24, %v2558_v35 }
 0x183   : > { %v1115_v45 = vpop.f32.mrf.mxu0 }
 0x184   : > { %v1113_v30 = vadd.f32 %v1112_v57, %v1064_v63 }
 0x186   : > { %v1195_v50 = vpop.f32.mrf.mxu2 }
 0x187   : > { %v1196_v8 = vadd.f32 %v1195_v50, %v1147_v49 }
 0x188   : > { %v1149_v51 = vpop.f32.mrf.mxu1 }
 0x189   : > { %v1225_v19 = vmax.f32 %v1196_v8, 0.0  ;;  %v1150_v34 = vadd.f32 %v1149_v51, %v1101_v61  ;;  %v1066_v38 = vpop.f32.mrf.mxu3 }
 0x18b   : > { %v1237_v6 = vpack.c.bf16 %v1225_v19, %v1224_v54  ;;  %v1067_v54 = vadd.f32 %v1066_v38, %v2563_v56  ;;  %v1117_v53 = vpop.f32.mrf.mxu0 }
 0x18d   : > { %1950 = vmatmul.msk.bf16.gmra.mxu3 %vm1278_vm1, %v1237_v6  ;;  %v1116_v6 = vadd.f32 %v1115_v45, %v1067_v54 }
 0x18e   : > { %v1198_v25 = vpop.f32.mrf.mxu2 }
 0x18f   : > { %v1199_v3 = vadd.f32 %v1198_v25, %v1150_v34 }
 0x190   : > { %v1151_v60 = vpop.f32.mrf.mxu1 }
 0x191   : > { %v1152_v4 = vadd.f32 %v1151_v60, %v1103_v62  ;;  %v1226_v9 = vmax.f32 %v1199_v3, 0.0  ;;  %v1068_v51 = vpop.f32.mrf.mxu3  ;;  %v2072_v3 = vld [vmem:[%s2766_s4] ss:$0 sm:$0xff] }
 0x192   : > { %v1069_v19 = vadd.f32 %v1068_v51, %v2565_v26 }
 0x194   : > { %v1118_v15 = vadd.f32 %v1117_v53, %v1069_v19 }
 0x196   : > { %v1200_v5 = vpop.f32.mrf.mxu2 }
 0x197   : > { %v1201_v21 = vadd.f32 %v1200_v5, %v1152_v4 }
 0x198   : > { %v1154_v7 = vpop.f32.mrf.mxu1 }
 0x199   : > { %v1227_v10 = vmax.f32 %v1201_v21, 0.0  ;;  %v1155_v17 = vadd.f32 %v1154_v7, %v1106_v14 }
 0x19b   : > { %v1238_v11 = vpack.c.bf16 %v1227_v10, %v1226_v9 }
 0x19d   : > { %1951 = vmatmul.msk.bf16.gmra.mxu3 %vm1278_vm1, %v1238_v11 }
 0x19e   : > { %v1203_v12 = vpop.f32.mrf.mxu2 }
 0x19f   : > { %v1204_v18 = vadd.f32 %v1203_v12, %v1155_v17 }
 0x1a0   : > { %v1156_v13 = vpop.f32.mrf.mxu1 }
 0x1a1   : > { %v1157_v20 = vadd.f32 %v1156_v13, %v1108_v44  ;;  %v1228_v52 = vmax.f32 %v1204_v18, 0.0 }
 0x1a6   : > { %v1205_v22 = vpop.f32.mrf.mxu2 }
 0x1a7   : > { %v1206_v23 = vadd.f32 %v1205_v22, %v1157_v20 }
 0x1a8   : > { %v1159_v28 = vpop.f32.mrf.mxu1 }
 0x1a9   : > { %v1229_v29 = vmax.f32 %v1206_v23, 0.0  ;;  %v1160_v43 = vadd.f32 %v1159_v28, %v1111_v37 }
 0x1ab   : > { %v1239_v41 = vpack.c.bf16 %v1229_v29, %v1228_v52 }
 0x1ad   : > { %1952 = vmatmul.msk.bf16.gmra.mxu3 %vm1278_vm1, %v1239_v41 }
 0x1ae   : > { %v1208_v32 = vpop.f32.mrf.mxu2 }
 0x1af   : > { %v1209_v39 = vadd.f32 %v1208_v32, %v1160_v43 }
 0x1b0   : > { %v1161_v36 = vpop.f32.mrf.mxu1 }
 0x1b1   : > { %v1162_v40 = vadd.f32 %v1161_v36, %v1113_v30  ;;  %v1230_v49 = vmax.f32 %v1209_v39, 0.0 }
 0x1b6   : > { %v1210_v46 = vpop.f32.mrf.mxu2 }
 0x1b7   : > { %v1211_v0 = vadd.f32 %v1210_v46, %v1162_v40 }
 0x1b8   : > { %v1164_v48 = vpop.f32.mrf.mxu1 }
 0x1b9   : > { %v1231_v50 = vmax.f32 %v1211_v0, 0.0  ;;  %v1165_v25 = vadd.f32 %v1164_v48, %v1116_v6 }
 0x1bb   : > { %v1240_v8 = vpack.c.bf16 %v1231_v50, %v1230_v49 }
 0x1bd   : > { %1953 = vmatmul.msk.bf16.gmra.mxu3 %vm1278_vm1, %v1240_v8 }
 0x1be   : > { %v1213_v35 = vpop.f32.mrf.mxu2 }
 0x1bf   : > { %v1214_v59 = vadd.f32 %v1213_v35, %v1165_v25 }
 0x1c0   : > { %v1166_v58 = vpop.f32.mrf.mxu1 }
 0x1c1   : > { %v1167_v60 = vadd.f32 %v1166_v58, %v1118_v15  ;;  %v1232_v62 = vmax.f32 %v1214_v59, 0.0  ;;  %v2073_v59 = vld [vmem:[%s2768_s6] ss:$0 sm:$0xff] }
 0x1c6   : > { %v1215_v61 = vpop.f32.mrf.mxu2 }
 0x1c7   : > { %v1216_v1 = vadd.f32 %v1215_v61, %v1167_v60 }
 0x1c9   : > { %v1233_v34 = vmax.f32 %v1216_v1, 0.0 }
 0x1cb   : > { %v1241_v2 = vpack.c.bf16 %v1233_v34, %v1232_v62 }
 0x1cd   : > { %1954 = vmatmul.msk.bf16.gmra.mxu3 %vm1278_vm1, %v1241_v2 }
 0x1e0   : > { %v1312_v56 = vpop.f32.mrf.mxu3 }
 0x1e1   : > { %v1313_v26 = vadd.f32 %v2072_v3, %v1312_v56 }
 0x1e3   : > { %v1352_v21 = vmax.f32 %v1313_v26, 0.0 }
 0x1e8   : > { %v1314_v4 = vpop.f32.mrf.mxu3 }
 0x1e9   : > { %v1315_v5 = vadd.f32 %v2072_v3, %v1314_v4 }
 0x1eb   : > { %v1353_v47 = vmax.f32 %v1315_v5, 0.0 }
 0x1ed   : > { %v1368_v7 = vpack.c.bf16 %v1353_v47, %v1352_v21 }
 0x1ef   : > { %1971 = vmatmul.msk.bf16.vlgmr.msra.gmra.mxu0 %vm1278_vm1, %v1368_v7 }
 0x1f0   : > { %v1317_v9 = vpop.f32.mrf.mxu3 }
 0x1f1   : > { %v1318_v10 = vadd.f32 %v2072_v3, %v1317_v9 }
 0x1f3   : > { %v1354_v27 = vmax.f32 %v1318_v10, 0.0 }
 0x1f8   : > { %v1319_v11 = vpop.f32.mrf.mxu3 }
 0x1f9   : > { %v1320_v33 = vadd.f32 %v2072_v3, %v1319_v11 }
 0x1fb   : > { %v1355_v12 = vmax.f32 %v1320_v33, 0.0 }
 0x1fd   : > { %v1369_v42 = vpack.c.bf16 %v1355_v12, %v1354_v27 }
 0x1ff   : > { %1972 = vmatmul.msk.bf16.gmra.mxu0 %vm1278_vm1, %v1369_v42 }
 0x200   : > { %v1322_v13 = vpop.f32.mrf.mxu3 }
 0x201   : > { %v1323_v14 = vadd.f32 %v2072_v3, %v1322_v13 }
 0x203   : > { %v1356_v17 = vmax.f32 %v1323_v14, 0.0 }
 0x208   : > { %v1324_v16 = vpop.f32.mrf.mxu3 }
 0x209   : > { %v1325_v44 = vadd.f32 %v2072_v3, %v1324_v16 }
 0x20b   : > { %v1357_v18 = vmax.f32 %v1325_v44, 0.0 }
 0x20d   : > { %v1370_v20 = vpack.c.bf16 %v1357_v18, %v1356_v17 }
 0x20f   : > { %1973 = vmatmul.msk.bf16.gmra.mxu0 %vm1278_vm1, %v1370_v20 }
 0x210   : > { %v1327_v22 = vpop.f32.mrf.mxu3 }
 0x211   : > { %v1328_v23 = vadd.f32 %v2072_v3, %v1327_v22 }
 0x213   : > { %v1358_v52 = vmax.f32 %v1328_v23, 0.0 }
 0x218   : > { %v1329_v24 = vpop.f32.mrf.mxu3 }
 0x219   : > { %v1330_v28 = vadd.f32 %v2072_v3, %v1329_v24 }
 0x21b   : > { %v1359_v29 = vmax.f32 %v1330_v28, 0.0 }
 0x21d   : > { %v1371_v41 = vpack.c.bf16 %v1359_v29, %v1358_v52 }
 0x21f   : > { %1974 = vmatmul.msk.bf16.gmra.mxu0 %vm1278_vm1, %v1371_v41 }
 0x220   : > { %v1332_v57 = vpop.f32.mrf.mxu3 }
 0x221   : > { %v1333_v31 = vadd.f32 %v2072_v3, %v1332_v57 }
 0x223   : > { %v1360_v63 = vmax.f32 %v1333_v31, 0.0 }
 0x228   : > { %v1334_v55 = vpop.f32.mrf.mxu3 }
 0x229   : > { %v1335_v32 = vadd.f32 %v2072_v3, %v1334_v55 }
 0x22b   : > { %v1361_v36 = vmax.f32 %v1335_v32, 0.0 }
 0x22d   : > { %v1372_v37 = vpack.c.bf16 %v1361_v36, %v1360_v63 }
 0x22f   : > { %1975 = vmatmul.msk.bf16.gmra.mxu0 %vm1278_vm1, %v1372_v37 }
 0x230   : > { %v1337_v38 = vpop.f32.mrf.mxu3 }
 0x231   : > { %v1338_v30 = vadd.f32 %v2072_v3, %v1337_v38 }
 0x233   : > { %v1362_v40 = vmax.f32 %v1338_v30, 0.0 }
 0x238   : > { %v1339_v43 = vpop.f32.mrf.mxu3 }
 0x239   : > { %v1340_v39 = vadd.f32 %v2072_v3, %v1339_v43 }
 0x23b   : > { %v1363_v45 = vmax.f32 %v1340_v39, 0.0 }
 0x23d   : > { %v1373_v46 = vpack.c.bf16 %v1363_v45, %v1362_v40 }
 0x23f   : > { %1976 = vmatmul.msk.bf16.gmra.mxu0 %vm1278_vm1, %v1373_v46 }
 0x240   : > { %v1342_v0 = vpop.f32.mrf.mxu3 }
 0x241   : > { %v1343_v48 = vadd.f32 %v2072_v3, %v1342_v0 }
 0x243   : > { %v1364_v8 = vmax.f32 %v1343_v48, 0.0 }
 0x248   : > { %v1344_v49 = vpop.f32.mrf.mxu3 }
 0x249   : > { %v1345_v50 = vadd.f32 %v2072_v3, %v1344_v49 }
 0x24b   : > { %v1365_v51 = vmax.f32 %v1345_v50, 0.0 }
 0x24d   : > { %v1374_v54 = vpack.c.bf16 %v1365_v51, %v1364_v8 }
 0x24f   : > { %1977 = vmatmul.msk.bf16.gmra.mxu0 %vm1278_vm1, %v1374_v54 }
 0x250   : > { %v1347_v35 = vpop.f32.mrf.mxu3 }
 0x251   : > { %v1348_v19 = vadd.f32 %v2072_v3, %v1347_v35 }
 0x253   : > { %v1366_v58 = vmax.f32 %v1348_v19, 0.0 }
 0x258   : > { %v1349_v53 = vpop.f32.mrf.mxu3 }
 0x259   : > { %v1350_v6 = vadd.f32 %v2072_v3, %v1349_v53 }
 0x25b   : > { %v1367_v15 = vmax.f32 %v1350_v6, 0.0 }
 0x25d   : > { %v1375_v25 = vpack.c.bf16 %v1367_v15, %v1366_v58 }
 0x25f   : > { %1978 = vmatmul.msk.bf16.gmra.mxu0 %vm1278_vm1, %v1375_v25 }
 0x26c   : > { %v1445_v60 = vpop.f32.mrf.mxu0 }
 0x26d   : > { %v1446_v61 = vadd.f32 %v2073_v59, %v1445_v60 }
 0x26f   : > { %1485 = vmax.xlane.f32.xlu0 %v1446_v61 }
 0x274   : > { %v1447_v1 = vpop.f32.mrf.mxu0 }
 0x275   : > { %v1448_v62 = vadd.f32 %v2073_v59, %v1447_v1 }
 0x277   : > { %1487 = vmax.xlane.f32.xlu0 %v1448_v62 }
 0x27c   : > { %v1450_v34 = vpop.f32.mrf.mxu0 }
 0x27d   : > { %v1451_v2 = vadd.f32 %v2073_v59, %v1450_v34 }
 0x27f   : > { %1489 = vmax.xlane.f32.xlu1 %v1451_v2 }
 0x284   : > { %v1452_v56 = vpop.f32.mrf.mxu0 }
 0x285   : > { %v1453_v3 = vadd.f32 %v2073_v59, %v1452_v56 }
 0x287   : > { %1491 = vmax.xlane.f32.xlu1 %v1453_v3 }
 0x28c   : > { %v1455_v26 = vpop.f32.mrf.mxu0 }
 0x28d   : > { %v1456_v4 = vadd.f32 %v2073_v59, %v1455_v26 }
 0x28f   : > { %1493 = vmax.xlane.f32.xlu2 %v1456_v4 }
 0x294   : > { %v1457_v5 = vpop.f32.mrf.mxu0 }
 0x295   : > { %v1458_v21 = vadd.f32 %v2073_v59, %v1457_v5 }
 0x297   : > { %1495 = vmax.xlane.f32.xlu2 %v1458_v21 }
 0x29c   : > { %v1460_v47 = vpop.f32.mrf.mxu0 }
 0x29d   : > { %v2617_v7 = vadd.f32 %v2073_v59, %v1460_v47 }
 0x29f   : > { %1497 = vmax.xlane.f32.xlu0 %v2617_v7 }
 0x2a4   : > { %v1462_v9 = vpop.f32.mrf.mxu0 }
 0x2a5   : > { %v2620_v10 = vadd.f32 %v2073_v59, %v1462_v9 }
 0x2a7   : > { %1499 = vmax.xlane.f32.xlu1 %v2620_v10 }
 0x2ac   : > { %v1465_v11 = vpop.f32.mrf.mxu0 }
 0x2ad   : > { %v2623_v33 = vadd.f32 %v2073_v59, %v1465_v11 }
 0x2af   : > { %1501 = vmax.xlane.f32.xlu2 %v2623_v33 }
 0x2b4   : > { %v1467_v27 = vpop.f32.mrf.mxu0 }
 0x2b5   : > { %v2626_v12 = vadd.f32 %v2073_v59, %v1467_v27 }
 0x2b7   : > { %1503 = vmax.xlane.f32.xlu0 %v2626_v12 }
 0x2bc   : > { %v1470_v42 = vpop.f32.mrf.mxu0 }
 0x2bd   : > { %v2629_v13 = vadd.f32 %v2073_v59, %v1470_v42 }
 0x2bf   : > { %1505 = vmax.xlane.f32.xlu1 %v2629_v13 }
 0x2c4   : > { %v1472_v14 = vpop.f32.mrf.mxu0 }
 0x2c5   : > { %v2632_v16 = vadd.f32 %v2073_v59, %v1472_v14 }
 0x2c7   : > { %1507 = vmax.xlane.f32.xlu2 %v2632_v16 }
 0x2cc   : > { %v1475_v44 = vpop.f32.mrf.mxu0 }
 0x2cd   : > { %v2635_v17 = vadd.f32 %v2073_v59, %v1475_v44 }
 0x2cf   : > { %1509 = vmax.xlane.f32.xlu0 %v2635_v17 }
 0x2d4   : > { %v1477_v18 = vpop.f32.mrf.mxu0 }
 0x2d5   : > { %v2638_v20 = vadd.f32 %v2073_v59, %v1477_v18 }
 0x2d7   : > { %1511 = vmax.xlane.f32.xlu1 %v2638_v20 }
 0x2dc   : > { %v1480_v22 = vpop.f32.mrf.mxu0 }
 0x2dd   : > { %v2641_v23 = vadd.f32 %v2073_v59, %v1480_v22 }
 0x2df   : > { %1513 = vmax.xlane.f32.xlu2 %v2641_v23 }
 0x2e2   : > { %v1486_v24 = vpop.xlane.xlu0 %1485 }
 0x2e3   : > { %v2644_v28 = vsub.f32 %v1446_v61, %v1486_v24 }
 0x2e4   : > { %v1482_v52 = vpop.f32.mrf.mxu0 }
 0x2e5   : > { %v1533_v29 = vmul.f32 1.442695, %v2644_v28  ;;  %v2647_v41 = vadd.f32 %v2073_v59, %v1482_v52 }
 0x2e7   : > { %2074 = vpow2.f32 %v1533_v29  ;;  %1515 = vmax.xlane.f32.xlu0 %v2647_v41 }
 0x2ea   : > { %v1488_v57 = vpop.xlane.xlu0 %1487 }
 0x2eb   : > { %v2650_v31 = vsub.f32 %v1448_v62, %v1488_v57 }
 0x2ed   : > { %v2075_v55 = vpop.eup %2074  ;;  %v1535_v32 = vmul.f32 1.442695, %v2650_v31 }
 0x2ee   : > { %1565 = vadd.xlane.f32.xlu1 %v2075_v55 }
 0x2ef   : > { %2076 = vpow2.f32 %v1535_v32 }
 0x2f2   : > { %v1490_v63 = vpop.xlane.xlu1 %1489 }
 0x2f3   : > { %v2653_v36 = vsub.f32 %v1451_v2, %v1490_v63 }
 0x2f5   : > { %v2077_v37 = vpop.eup %2076  ;;  %v1537_v38 = vmul.f32 1.442695, %v2653_v36 }
 0x2f6   : > { %1567 = vadd.xlane.f32.xlu2 %v2077_v37 }
 0x2f7   : > { %2078 = vpow2.f32 %v1537_v38 }
 0x2fa   : > { %v1492_v30 = vpop.xlane.xlu1 %1491 }
 0x2fb   : > { %v2656_v43 = vsub.f32 %v1453_v3, %v1492_v30 }
 0x2fd   : > { %v2079_v39 = vpop.eup %2078  ;;  %v1539_v40 = vmul.f32 1.442695, %v2656_v43 }
 0x2fe   : > { %1569 = vadd.xlane.f32.xlu0 %v2079_v39 }
 0x2ff   : > { %2080 = vpow2.f32 %v1539_v40 }
 0x302   : > { %v1494_v45 = vpop.xlane.xlu2 %1493 }
 0x303   : > { %v2659_v46 = vsub.f32 %v1456_v4, %v1494_v45 }
 0x305   : > { %v2081_v0 = vpop.eup %2080  ;;  %v1541_v48 = vmul.f32 1.442695, %v2659_v46 }
 0x306   : > { %1571 = vadd.xlane.f32.xlu1 %v2081_v0 }
 0x307   : > { %2082 = vpow2.f32 %v1541_v48 }
 0x30a   : > { %v1496_v49 = vpop.xlane.xlu2 %1495 }
 0x30b   : > { %v2662_v50 = vsub.f32 %v1458_v21, %v1496_v49 }
 0x30d   : > { %v2083_v8 = vpop.eup %2082  ;;  %v1543_v51 = vmul.f32 1.442695, %v2662_v50 }
 0x30e   : > { %1573 = vadd.xlane.f32.xlu2 %v2083_v8 }
 0x30f   : > { %2084 = vpow2.f32 %v1543_v51 }
 0x312   : > { %v1498_v54 = vpop.xlane.xlu0 %1497 }
 0x313   : > { %v2666_v35 = vsub.f32 %v2617_v7, %v1498_v54 }
 0x315   : > { %v2085_v19 = vpop.eup %2084  ;;  %v1545_v53 = vmul.f32 1.442695, %v2666_v35 }
 0x316   : > { %1575 = vadd.xlane.f32.xlu0 %v2085_v19 }
 0x317   : > { %2086 = vpow2.f32 %v1545_v53 }
 0x31a   : > { %v1500_v6 = vpop.xlane.xlu1 %1499 }
 0x31b   : > { %v2670_v58 = vsub.f32 %v2620_v10, %v1500_v6 }
 0x31d   : > { %v2087_v15 = vpop.eup %2086  ;;  %v1547_v25 = vmul.f32 1.442695, %v2670_v58 }
 0x31e   : > { %1577 = vadd.xlane.f32.xlu1 %v2087_v15 }
 0x31f   : > { %2088 = vpow2.f32 %v1547_v25 }
 0x322   : > { %v1502_v59 = vpop.xlane.xlu2 %1501 }
 0x323   : > { %v2674_v60 = vsub.f32 %v2623_v33, %v1502_v59 }
 0x325   : > { %v2089_v61 = vpop.eup %2088  ;;  %v1549_v1 = vmul.f32 1.442695, %v2674_v60 }
 0x326   : > { %1579 = vadd.xlane.f32.xlu2 %v2089_v61 }
 0x327   : > { %2090 = vpow2.f32 %v1549_v1 }
 0x32a   : > { %v1504_v62 = vpop.xlane.xlu0 %1503 }
 0x32b   : > { %v2678_v34 = vsub.f32 %v2626_v12, %v1504_v62 }
 0x32d   : > { %v2091_v2 = vpop.eup %2090  ;;  %v1551_v56 = vmul.f32 1.442695, %v2678_v34 }
 0x32e   : > { %1581 = vadd.xlane.f32.xlu0 %v2091_v2 }
 0x32f   : > { %2092 = vpow2.f32 %v1551_v56 }
 0x332   : > { %v1506_v3 = vpop.xlane.xlu1 %1505 }
 0x333   : > { %v2682_v26 = vsub.f32 %v2629_v13, %v1506_v3 }
 0x335   : > { %v2093_v4 = vpop.eup %2092  ;;  %v1553_v5 = vmul.f32 1.442695, %v2682_v26 }
 0x336   : > { %1583 = vadd.xlane.f32.xlu1 %v2093_v4 }
 0x337   : > { %2094 = vpow2.f32 %v1553_v5 }
 0x33a   : > { %v1508_v21 = vpop.xlane.xlu2 %1507 }
 0x33b   : > { %v2686_v47 = vsub.f32 %v2632_v16, %v1508_v21 }
 0x33d   : > { %v2095_v7 = vpop.eup %2094  ;;  %v1555_v9 = vmul.f32 1.442695, %v2686_v47 }
 0x33e   : > { %1585 = vadd.xlane.f32.xlu2 %v2095_v7 }
 0x33f   : > { %2096 = vpow2.f32 %v1555_v9 }
 0x342   : > { %v1510_v10 = vpop.xlane.xlu0 %1509 }
 0x343   : > { %v2690_v11 = vsub.f32 %v2635_v17, %v1510_v10 }
 0x345   : > { %v2097_v33 = vpop.eup %2096  ;;  %v1557_v27 = vmul.f32 1.442695, %v2690_v11 }
 0x346   : > { %1587 = vadd.xlane.f32.xlu0 %v2097_v33 }
 0x347   : > { %2098 = vpow2.f32 %v1557_v27 }
 0x34a   : > { %v1512_v12 = vpop.xlane.xlu1 %1511 }
 0x34b   : > { %v2694_v42 = vsub.f32 %v2638_v20, %v1512_v12 }
 0x34d   : > { %v2099_v13 = vpop.eup %2098  ;;  %v1559_v14 = vmul.f32 1.442695, %v2694_v42 }
 0x34e   : > { %1589 = vadd.xlane.f32.xlu1 %v2099_v13 }
 0x34f   : > { %2100 = vpow2.f32 %v1559_v14 }
 0x352   : > { %v1514_v16 = vpop.xlane.xlu2 %1513 }
 0x353   : > { %v2698_v44 = vsub.f32 %v2641_v23, %v1514_v16 }
 0x355   : > { %v2101_v17 = vpop.eup %2100  ;;  %v1561_v18 = vmul.f32 1.442695, %v2698_v44 }
 0x356   : > { %1591 = vadd.xlane.f32.xlu2 %v2101_v17 }
 0x357   : > { %2102 = vpow2.f32 %v1561_v18 }
 0x35a   : > { %v1516_v22 = vpop.xlane.xlu0 %1515 }
 0x35b   : > { %v2702_v24 = vsub.f32 %v2647_v41, %v1516_v22 }
 0x35d   : > { %v2103_v20 = vpop.eup %2102  ;;  %v1563_v52 = vmul.f32 1.442695, %v2702_v24 }
 0x35e   : > { %1593 = vadd.xlane.f32.xlu0 %v2103_v20 }
 0x35f   : > { %2104 = vpow2.f32 %v1563_v52 }
 0x361   : > { %v1566_v29 = vpop.xlane.xlu1 %1565 }
 0x362   : > { %2106 = vlog2.f32 %v1566_v29 }
 0x365   : > { %v2105_v57 = vpop.eup %2104 }
 0x366   : > { %1595 = vadd.xlane.f32.xlu1 %v2105_v57 }
 0x368   : > { %v2107_v23 = vpop.eup %2106 }
 0x369   : > { %v1598_v55 = vmul.f32 0.6931472, %v2107_v23  ;;  %v1568_v32 = vpop.xlane.xlu2 %1567 }
 0x36a   : > { %2108 = vlog2.f32 %v1568_v32 }
 0x36b   : > { %v1629_v41 = vsub.f32 %v2644_v28, %v1598_v55 }
 0x36d   : > { %1646 = vst.msk [vmem:[%s2709_s8] sm:$0xff] %vm1645_vm2, %v1629_v41 }
 0x370   : > { %v2109_v63 = vpop.eup %2108 }
 0x371   : > { %v1600_v37 = vmul.f32 0.6931472, %v2109_v63  ;;  %v1570_v38 = vpop.xlane.xlu0 %1569 }
 0x372   : > { %2110 = vlog2.f32 %v1570_v38 }
 0x373   : > { %v1630_v30 = vsub.f32 %v2650_v31, %v1600_v37 }
 0x375   : > { %1647 = vst.msk [vmem:[%s2709_s8 + $0x8] sm:$0xff] %vm1645_vm2, %v1630_v30 }
 0x378   : > { %v2111_v39 = vpop.eup %2110 }
 0x379   : > { %v1602_v40 = vmul.f32 0.6931472, %v2111_v39  ;;  %v1572_v45 = vpop.xlane.xlu1 %1571 }
 0x37a   : > { %2112 = vlog2.f32 %v1572_v45 }
 0x37b   : > { %v1631_v0 = vsub.f32 %v2653_v36, %v1602_v40 }
 0x37d   : > { %1648 = vst.msk [vmem:[%s2709_s8 + $0x10] sm:$0xff] %vm1645_vm2, %v1631_v0 }
 0x380   : > { %v2113_v28 = vpop.eup %2112 }
 0x381   : > { %v1604_v48 = vmul.f32 0.6931472, %v2113_v28  ;;  %v1574_v49 = vpop.xlane.xlu2 %1573 }
 0x382   : > { %2114 = vlog2.f32 %v1574_v49 }
 0x383   : > { %v1632_v8 = vsub.f32 %v2656_v43, %v1604_v48 }
 0x385   : > { %1649 = vst.msk [vmem:[%s2709_s8 + $0x18] sm:$0xff] %vm1645_vm2, %v1632_v8 }
 0x388   : > { %v2115_v31 = vpop.eup %2114 }
 0x389   : > { %v1606_v51 = vmul.f32 0.6931472, %v2115_v31  ;;  %v1576_v54 = vpop.xlane.xlu0 %1575 }
 0x38a   : > { %2116 = vlog2.f32 %v1576_v54 }
 0x38b   : > { %v1633_v19 = vsub.f32 %v2659_v46, %v1606_v51 }
 0x38d   : > { %1650 = vst.msk [vmem:[%s2709_s8 + $0x20] sm:$0xff] %vm1645_vm2, %v1633_v19 }
 0x390   : > { %v2117_v36 = vpop.eup %2116 }
 0x391   : > { %v1608_v53 = vmul.f32 0.6931472, %v2117_v36  ;;  %v1578_v6 = vpop.xlane.xlu1 %1577 }
 0x392   : > { %2118 = vlog2.f32 %v1578_v6 }
 0x393   : > { %v1634_v15 = vsub.f32 %v2662_v50, %v1608_v53 }
 0x395   : > { %1651 = vst.msk [vmem:[%s2709_s8 + $0x28] sm:$0xff] %vm1645_vm2, %v1634_v15 }
 0x398   : > { %v2119_v43 = vpop.eup %2118 }
 0x399   : > { %v1610_v25 = vmul.f32 0.6931472, %v2119_v43  ;;  %v1580_v59 = vpop.xlane.xlu2 %1579 }
 0x39a   : > { %2120 = vlog2.f32 %v1580_v59 }
 0x39b   : > { %v1635_v61 = vsub.f32 %v2666_v35, %v1610_v25 }
 0x39d   : > { %1652 = vst.msk [vmem:[%s2709_s8 + $0x30] sm:$0xff] %vm1645_vm2, %v1635_v61 }
 0x3a0   : > { %v2121_v46 = vpop.eup %2120 }
 0x3a1   : > { %v1612_v1 = vmul.f32 0.6931472, %v2121_v46  ;;  %v1582_v62 = vpop.xlane.xlu0 %1581 }
 0x3a2   : > { %2122 = vlog2.f32 %v1582_v62 }
 0x3a3   : > { %v1636_v2 = vsub.f32 %v2670_v58, %v1612_v1 }
 0x3a5   : > { %1653 = vst.msk [vmem:[%s2709_s8 + $0x38] sm:$0xff] %vm1645_vm2, %v1636_v2 }
 0x3a8   : > { %v2123_v50 = vpop.eup %2122 }
 0x3a9   : > { %v1614_v56 = vmul.f32 0.6931472, %v2123_v50  ;;  %v1584_v3 = vpop.xlane.xlu1 %1583 }
 0x3aa   : > { %2124 = vlog2.f32 %v1584_v3 }
 0x3ab   : > { %v1637_v4 = vsub.f32 %v2674_v60, %v1614_v56 }
 0x3ad   : > { %1654 = vst.msk [vmem:[%s2709_s8 + $0x40] sm:$0xff] %vm1645_vm2, %v1637_v4 }
 0x3b0   : > { %v2125_v35 = vpop.eup %2124 }
 0x3b1   : > { %v1616_v5 = vmul.f32 0.6931472, %v2125_v35  ;;  %v1586_v21 = vpop.xlane.xlu2 %1585 }
 0x3b2   : > { %2126 = vlog2.f32 %v1586_v21 }
 0x3b3   : > { %v1638_v7 = vsub.f32 %v2678_v34, %v1616_v5 }
 0x3b5   : > { %1655 = vst.msk [vmem:[%s2709_s8 + $0x48] sm:$0xff] %vm1645_vm2, %v1638_v7 }
 0x3b8   : > { %v2127_v58 = vpop.eup %2126 }
 0x3b9   : > { %v1618_v9 = vmul.f32 0.6931472, %v2127_v58  ;;  %v1588_v10 = vpop.xlane.xlu0 %1587 }
 0x3ba   : > { %2128 = vlog2.f32 %v1588_v10 }
 0x3bb   : > { %v1639_v33 = vsub.f32 %v2682_v26, %v1618_v9 }
 0x3bd   : > { %1656 = vst.msk [vmem:[%s2709_s8 + $0x50] sm:$0xff] %vm1645_vm2, %v1639_v33 }
 0x3c0   : > { %v2129_v60 = vpop.eup %2128 }
 0x3c1   : > { %v1620_v27 = vmul.f32 0.6931472, %v2129_v60  ;;  %v1590_v12 = vpop.xlane.xlu1 %1589 }
 0x3c2   : > { %2130 = vlog2.f32 %v1590_v12 }
 0x3c3   : > { %v1640_v13 = vsub.f32 %v2686_v47, %v1620_v27 }
 0x3c5   : > { %1657 = vst.msk [vmem:[%s2709_s8 + $0x58] sm:$0xff] %vm1645_vm2, %v1640_v13 }
 0x3c8   : > { %v2131_v34 = vpop.eup %2130 }
 0x3c9   : > { %v1622_v14 = vmul.f32 0.6931472, %v2131_v34  ;;  %v1592_v16 = vpop.xlane.xlu2 %1591 }
 0x3ca   : > { %2132 = vlog2.f32 %v1592_v16 }
 0x3cb   : > { %v1641_v17 = vsub.f32 %v2690_v11, %v1622_v14 }
 0x3cd   : > { %1658 = vst.msk [vmem:[%s2709_s8 + $0x60] sm:$0xff] %vm1645_vm2, %v1641_v17 }
 0x3d0   : > { %v2133_v26 = vpop.eup %2132 }
 0x3d1   : > { %v1624_v18 = vmul.f32 0.6931472, %v2133_v26  ;;  %v1594_v22 = vpop.xlane.xlu0 %1593 }
 0x3d2   : > { %2134 = vlog2.f32 %v1594_v22 }
 0x3d3   : > { %v1642_v20 = vsub.f32 %v2694_v42, %v1624_v18 }
 0x3d5   : > { %1659 = vst.msk [vmem:[%s2709_s8 + $0x68] sm:$0xff] %vm1645_vm2, %v1642_v20 }
 0x3d8   : > { %v2135_v47 = vpop.eup %2134 }
 0x3d9   : > { %v1626_v52 = vmul.f32 0.6931472, %v2135_v47  ;;  %v1596_v29 = vpop.xlane.xlu1 %1595 }
 0x3da   : > { %2136 = vlog2.f32 %v1596_v29 }
 0x3db   : > { %v1643_v57 = vsub.f32 %v2698_v44, %v1626_v52 }
 0x3dd   : > { %1660 = vst.msk [vmem:[%s2709_s8 + $0x70] sm:$0xff] %vm1645_vm2, %v1643_v57 }
 0x3e0   : > { %v2137_v11 = vpop.eup %2136 }
 0x3e1   : > { %v1628_v23 = vmul.f32 0.6931472, %v2137_v11 }
 0x3e3   : > { %v1644_v55 = vsub.f32 %v2702_v24, %v1628_v23 }
 0x3e5   : > { %1661 = vst.msk [vmem:[%s2709_s8 + $0x78] sm:$0xff] %vm1645_vm2, %v1644_v55 }
 0x3e6 PF: > { %s17_s24 = sadd.s32 1, %s2144_s24  }
 0x3e7   : > { %p14_p4 = scmp.ge.s32.totalorder %s17_s24, 4  }
 0x3e9   :  { %16 = sbr.rel (!%p14_p4) target bundleno = 1 (0x1), region = 78 }

</bundles_post_ra>
